<compile_context>
chip_gen: v7x
topology: tpu7x:2x2x1
jax: 0.10.0
libtpu: 0.0.40
codegen_flags: <defaults>
</compile_context>

<pallas_src>
import functools

import jax
import jax.numpy as jnp
from jax.experimental import pallas as pl
from jax.experimental.pallas import tpu as pltpu

LANE = 128
_MIB = 1024 * 1024


def _round_up(x, m):
    return (x + m - 1) // m * m


def _pad_to(a, shape, dtype):
    """Zero-pad `a` up to `shape` and cast to `dtype`."""
    out = jnp.zeros(shape, dtype)
    return out.at[tuple(slice(0, s) for s in a.shape)].set(a.astype(dtype))


def _tpu_vmem_bytes():
    try:
        return int(pltpu.get_tpu_info().vmem_capacity_bytes)
    except Exception:
        return 64 * _MIB          # conservative fallback (v7x per-core VMEM)


def _pick_block_rows(vmem_bytes):
    """Generation-aware row/K tile: 128 on v5e & 64 MiB parts, 256 on v6e."""
    kind = ""
    try:
        kind = jax.devices()[0].device_kind.lower()
    except Exception:
        pass
    if "v5 lite" in kind or "v5e" in kind or "v5lite" in kind:
        return 128                # v5e MXU is 128-wide; larger tiles only add VMEM
    return 256 if vmem_bytes >= 96 * _MIB else 128


def _combined_fwd_kernel(feat_ref, fadj_ref, sadj_ref,
                         wz_ref, wxh_ref, wgcn_ref, b_ref,
                         z_ref, xhat_ref, gcn_ref,
                         s1_ref, s2_ref, s3_ref, acc_ref):
    p = pl.program_id(0)               # phase: 0 -> z, 1 -> xhat, 2 -> gcn
    r = pl.program_id(1)               # output row tile
    k = pl.program_id(2)               # adjacency-column (contraction) tile
    nk = pl.num_programs(2)
    tm = fadj_ref.shape[0]
    f_pad = feat_ref.shape[2]
    h1 = wz_ref.shape[1]
    h2 = wxh_ref.shape[1]

    rows = pl.ds(pl.multiple_of(r * tm, tm), tm)    # rows of this output tile
    kcols = pl.ds(pl.multiple_of(k * tm, tm), tm)   # contraction slice (tk == tm)

    # --- phase 0, first row-tile sweep: build S1 = [feat | feat_a] @ W_z -----
    # Both streams fused into ONE (2*tm, f_pad) @ (f_pad, h1) matmul; S1 is
    # packed along lanes so the adjacency matmuls below run with N = 2*h1.
    @pl.when(jnp.logical_and(p == 0, r == 0))
    def _build_s1():
        f2 = feat_ref[...].reshape(2 * tm, f_pad)
        s1 = jnp.dot(f2, wz_ref[...], preferred_element_type=jnp.float32)
        s1_ref[kcols, :h1] = s1[:tm].astype(s1_ref.dtype)
        s1_ref[kcols, h1:] = s1[tm:].astype(s1_ref.dtype)

    # ----------------------- K-tile accumulation (f32) -----------------------
    @pl.when(k == 0)
    def _init_acc():
        acc_ref[...] = jnp.zeros_like(acc_ref)

    @pl.when(p == 0)
    def _acc_z():          # z (both streams): fadj @ S1, N = 2*h1
        acc_ref[:, :2 * h1] += jnp.dot(fadj_ref[...], s1_ref[kcols, :],
                                       preferred_element_type=jnp.float32)

    @pl.when(p == 1)
    def _acc_xhat():       # xhat (both streams): fadj @ S2, N = 2*h2
        acc_ref[:, :2 * h2] += jnp.dot(fadj_ref[...], s2_ref[kcols, :],
                                       preferred_element_type=jnp.float32)

    @pl.when(p == 2)
    def _acc_gcn():        # gcn: sadj @ S3, N = h2
        acc_ref[:, :h2] += jnp.dot(sadj_ref[...], s3_ref[kcols, :],
                                   preferred_element_type=jnp.float32)

    # -------------------- finalize current row tile at k == last -------------
    last_k = nk - 1

    @pl.when(jnp.logical_and(p == 0, k == last_k))
    def _finalize_z():
        zcat = acc_ref[:, :2 * h1]                    # [z_ori | z_aug], f32
        z_ref[...] = zcat.astype(z_ref.dtype)
        # S2 = z @ W_xh per stream (kept in f32 through these tiny dots).
        wxh = wxh_ref[...]
        s2_ref[rows, :h2] = jnp.dot(
            zcat[:, :h1], wxh,
            preferred_element_type=jnp.float32).astype(s2_ref.dtype)
        s2_ref[rows, h2:] = jnp.dot(
            zcat[:, h1:], wxh,
            preferred_element_type=jnp.float32).astype(s2_ref.dtype)

    @pl.when(jnp.logical_and(p == 1, k == last_k))
    def _finalize_xhat():
        xcat = acc_ref[:, :2 * h2]                    # [xhat_ori | xhat_aug], f32
        xhat_ref[...] = xcat[:, :h2].astype(xhat_ref.dtype)
        # F.dropout(xhat_aug, p, training=False) == identity (inference).
        s3_ref[rows, :] = jnp.dot(
            xcat[:, h2:], wgcn_ref[...],
            preferred_element_type=jnp.float32).astype(s3_ref.dtype)

    @pl.when(jnp.logical_and(p == 2, k == last_k))
    def _finalize_gcn():
        gcn_ref[...] = (acc_ref[:, :h2] + b_ref[...]).astype(gcn_ref.dtype)


@functools.partial(jax.jit, static_argnames=("tm", "vmem_limit"))
def _forward_padded(params, feat, feat_a, fadj, sadj, *, tm, vmem_limit):
    n, nfeat = feat.shape
    nhid1 = params["w_z"].shape[1]
    nhid2 = params["w_xh"].shape[1]

    n_pad = _round_up(n, tm)
    f_pad = _round_up(nfeat, LANE)
    h1 = _round_up(nhid1, LANE)
    h2 = _round_up(nhid2, LANE)
    nr = n_pad // tm                    # row tiles == K tiles (tk == tm)
    acc_w = 2 * max(h1, h2)
    last_r = nr - 1

    # Lane-dense zero padding.  Adjacency + S scratch run the big matmuls in
    # bf16 (full MXU rate); feat / weights / bias stay f32 for accuracy.
    feat_b = jnp.stack([_pad_to(feat, (n_pad, f_pad), jnp.float32),
                        _pad_to(feat_a, (n_pad, f_pad), jnp.float32)])
    fadj_p = _pad_to(fadj, (n_pad, n_pad), jnp.bfloat16)
    sadj_p = _pad_to(sadj, (n_pad, n_pad), jnp.bfloat16)
    wz_p = _pad_to(params["w_z"], (f_pad, h1), jnp.float32)
    wxh_p = _pad_to(params["w_xh"], (h1, h2), jnp.float32)
    wgcn_p = _pad_to(params["w_gcn"], (h2, h2), jnp.float32)
    b_p = _pad_to(params["b_gcn"].reshape(1, -1), (1, h2), jnp.float32)

    # ----- index maps: grid = (phase, row_tile, k_tile) ----------------------
    def _feat_idx(p, r, k):             # swept by k during phase 0's first r
        return (0, jnp.where(jnp.logical_and(p == 0, r == 0), k, last_r), 0)

    def _fadj_idx(p, r, k):             # consumed in phases 0 and 1
        on = p <= 1
        return (jnp.where(on, r, last_r), jnp.where(on, k, last_r))

    def _sadj_idx(p, r, k):             # consumed in phase 2 only
        on = p == 2
        return (jnp.where(on, r, 0), jnp.where(on, k, 0))

    def _out_row(p, r, wp):
        # pinned at 0 before the writing phase, follows r during it, pinned at
        # the last (already written) block afterwards -> no garbage writebacks.
        return jnp.where(p < wp, 0, jnp.where(p > wp, last_r, r))

    const = lambda p, r, k: (0, 0)

    grid_spec = pltpu.PrefetchScalarGridSpec(
        num_scalar_prefetch=0,
        grid=(3, nr, nr),
        in_specs=[
            pl.BlockSpec((2, tm, f_pad), _feat_idx),    # feat / feat_a (stacked)
            pl.BlockSpec((tm, tm), _fadj_idx),          # fadj (row, K) tile
            pl.BlockSpec((tm, tm), _sadj_idx),          # sadj (row, K) tile
            pl.BlockSpec((f_pad, h1), const),           # W_z
            pl.BlockSpec((h1, h2), const),              # W_xh
            pl.BlockSpec((h2, h2), const),              # W_gcn
            pl.BlockSpec((1, h2), const),               # bias (GCN only)
        ],
        out_specs=[
            pl.BlockSpec((tm, 2 * h1), lambda p, r, k: (_out_row(p, r, 0), 0)),
            pl.BlockSpec((tm, h2), lambda p, r, k: (_out_row(p, r, 1), 0)),
            pl.BlockSpec((tm, h2), lambda p, r, k: (_out_row(p, r, 2), 0)),
        ],
        scratch_shapes=[
            pltpu.VMEM((n_pad, 2 * h1), jnp.bfloat16),  # S1 = [feat|feat_a]@W_z
            pltpu.VMEM((n_pad, 2 * h2), jnp.bfloat16),  # S2 = [z_ori|z_aug]@W_xh
            pltpu.VMEM((n_pad, h2), jnp.bfloat16),      # S3 = xhat_aug @ W_gcn
            pltpu.VMEM((tm, acc_w), jnp.float32),       # per-row-tile accumulator
        ],
    )

    z_pk, xhat_o, gcn_o = pl.pallas_call(
        _combined_fwd_kernel,
        grid_spec=grid_spec,
        out_shape=(
            jax.ShapeDtypeStruct((n_pad, 2 * h1), jnp.bfloat16),  # [z_ori | z_aug]
            jax.ShapeDtypeStruct((n_pad, h2), jnp.bfloat16),      # xhat_ori
            jax.ShapeDtypeStruct((n_pad, h2), jnp.bfloat16),      # gcn_output
        ),
        compiler_params=pltpu.CompilerParams(
            # Layer L+1 needs all rows of layer L and K tiles accumulate into
            # one buffer -> all axes execute in order on a single core.
            dimension_semantics=("arbitrary", "arbitrary", "arbitrary"),
            vmem_limit_bytes=vmem_limit,
        ),
    )(feat_b, fadj_p, sadj_p, wz_p, wxh_p, wgcn_p, b_p)

    z_ori = z_pk[:n, :nhid1].astype(jnp.float32)
    z_aug = z_pk[:n, h1:h1 + nhid1].astype(jnp.float32)
    xhat_ori = xhat_o[:n, :nhid2].astype(jnp.float32)
    gcn_output = gcn_o[:n, :nhid2].astype(jnp.float32)
    return z_ori, z_aug, xhat_ori, gcn_output


def combined_model_forward(params, feat, feat_a, fadj, sadj, *, block_rows=None):
    """Mirrors CombinedModel.forward (inference mode) with one fused kernel."""
    n, nfeat = feat.shape
    nhid1 = params["w_z"].shape[1]
    nhid2 = params["w_xh"].shape[1]

    vmem_bytes = _tpu_vmem_bytes()
    tm = block_rows if block_rows is not None else _pick_block_rows(vmem_bytes)

    n_pad = _round_up(n, tm)
    f_pad = _round_up(nfeat, LANE)
    h1 = _round_up(nhid1, LANE)
    h2 = _round_up(nhid2, LANE)
    acc_w = 2 * max(h1, h2)

    # VMEM requirement: double-buffered pipeline blocks + persistent scratch.
    est = (2 * (2 * tm * f_pad) * 4                         # feat blocks (f32)
           + 2 * 2 * (tm * tm) * 2                          # fadj + sadj blocks (bf16)
           + 2 * (f_pad * h1 + h1 * h2 + h2 * h2 + h2) * 4  # weights + bias (f32)
           + 2 * (2 * tm * h1 + 2 * tm * h2) * 2            # output blocks (bf16)
           + n_pad * (2 * h1 + 2 * h2 + h2) * 2             # persistent S1/S2/S3
           + tm * acc_w * 4)                                # f32 accumulator
    cap = max(32 * _MIB, (vmem_bytes * 3) // 4)             # headroom for Mosaic
    if est > cap:
        raise ValueError(
            f"Fused CombinedModel kernel needs ~{est / _MIB:.1f} MiB VMEM but "
            f"only ~{cap / _MIB:.1f} MiB is available; reduce block_rows "
            f"(got {tm}) or split the graph (persistent S1-S3 scratch scales "
            f"with the number of nodes).")
    vmem_limit = int(min(cap, max(32 * _MIB, int(1.25 * est) + 4 * _MIB)))

    return _forward_padded(params, feat, feat_a, fadj, sadj,
                           tm=tm, vmem_limit=vmem_limit)


def init_params(key, nfeat, nhid1, nhid2):
    """uniform(-1/sqrt(fan_in), +1/sqrt(fan_in)) init, matching the reference."""
    k1, k2, k3, k4 = jax.random.split(key, 4)

    def uinit(k, shape, fan_in):
        bound = 1.0 / jnp.sqrt(jnp.float32(fan_in))
        return jax.random.uniform(k, shape, jnp.float32, -bound, bound)

    return {
        "w_z": uinit(k1, (nfeat, nhid1), nfeat),     # GraphDeConvolution (no bias)
        "w_xh": uinit(k2, (nhid1, nhid2), nhid1),    # GraphDeConvolution (no bias)
        "w_gcn": uinit(k3, (nhid2, nhid2), nhid2),   # GraphConvolution
        "b_gcn": uinit(k4, (1, nhid2), nhid2),
    }


def _reference_forward(params, feat, feat_a, fadj, sadj):
    """Pure-JAX f32 reference for validation."""
    deconv = lambda x, w, adj: adj @ (x @ w)
    z_ori = deconv(feat, params["w_z"], fadj)
    z_aug = deconv(feat_a, params["w_z"], fadj)
    xhat_ori = deconv(z_ori, params["w_xh"], fadj)
    xhat_aug = deconv(z_aug, params["w_xh"], fadj)
    gcn = sadj @ (xhat_aug @ params["w_gcn"]) + params["b_gcn"]
    return z_ori, z_aug, xhat_ori, gcn


if __name__ == "__main__":
    # num_nodes > block_rows so the multi-row-tile / multi-K-tile paths and the
    # phase/row/k index-map pinning are actually exercised.
    num_nodes, nfeat, nhid1, nhid2 = 300, 32, 16, 8
    key = jax.random.PRNGKey(0)
    k_feat, k_feat_a, k_fadj, k_sadj, k_params = jax.random.split(key, 5)

    feat = jax.random.normal(k_feat, (num_nodes, nfeat), jnp.float32)
    feat_a = jax.random.normal(k_feat_a, (num_nodes, nfeat), jnp.float32)
    # Dense row-normalized "adjacency" stand-ins.
    fadj = jax.nn.softmax(
        jax.random.normal(k_fadj, (num_nodes, num_nodes), jnp.float32), axis=-1)
    sadj = jax.nn.softmax(
        jax.random.normal(k_sadj, (num_nodes, num_nodes), jnp.float32), axis=-1)

    params = init_params(k_params, nfeat, nhid1, nhid2)

    outs = combined_model_forward(params, feat, feat_a, fadj, sadj)
    jax.block_until_ready(outs)
    z_ori, z_aug, xhat_ori, gcn_output = outs

    assert z_ori.shape == (num_nodes, nhid1)
    assert z_aug.shape == (num_nodes, nhid1)
    assert xhat_ori.shape == (num_nodes, nhid2)
    assert gcn_output.shape == (num_nodes, nhid2)

    # Validate against the f32 reference (bf16 adjacency / scratch / outputs).
    refs = _reference_forward(params, feat, feat_a, fadj, sadj)
    for got, want in zip(outs, refs):
        assert jnp.allclose(got, want, rtol=3e-2, atol=3e-2), \
            float(jnp.max(jnp.abs(got - want)))

    print("KERNEL_OK")
</pallas_src>

<mosaic_0001>
module attributes {stable_mosaic.version = 11 : i64} {
  func.func @_combined_fwd_kernel(%arg0: i32, %arg1: i32, %arg2: i32, %arg3: memref<2x128x128xf32, #tpu.memory_space<vmem>>, %arg4: memref<128x128xbf16, #tpu.memory_space<vmem>>, %arg5: memref<128x128xbf16, #tpu.memory_space<vmem>>, %arg6: memref<128x128xf32, #tpu.memory_space<vmem>>, %arg7: memref<128x128xf32, #tpu.memory_space<vmem>>, %arg8: memref<128x128xf32, #tpu.memory_space<vmem>>, %arg9: memref<1x128xf32, #tpu.memory_space<vmem>>, %arg10: memref<128x256xbf16, #tpu.memory_space<vmem>>, %arg11: memref<128x128xbf16, #tpu.memory_space<vmem>>, %arg12: memref<128x128xbf16, #tpu.memory_space<vmem>>, %arg13: memref<384x256xbf16, #tpu.memory_space<vmem>>, %arg14: memref<384x256xbf16, #tpu.memory_space<vmem>>, %arg15: memref<384x128xbf16, #tpu.memory_space<vmem>>, %arg16: memref<128x256xf32, #tpu.memory_space<vmem>>) attributes {dimension_semantics = [#tpu.dimension_semantics<arbitrary>, #tpu.dimension_semantics<arbitrary>, #tpu.dimension_semantics<arbitrary>], iteration_bounds = array<i64: 3, 3, 3>, scalar_prefetch = 0 : i64, scratch_operands = 4 : i64, tpu.core_type = #tpu.core_type<tc>, window_params = [{transform_indices = @transform_0, window_bounds = array<i64: 2, 128, 128>}, {transform_indices = @transform_1, window_bounds = array<i64: 128, 128>}, {transform_indices = @transform_2, window_bounds = array<i64: 128, 128>}, {pipeline_mode = #tpu.pipeline_mode<synchronous>, transform_indices = @transform_3, window_bounds = array<i64: 128, 128>}, {pipeline_mode = #tpu.pipeline_mode<synchronous>, transform_indices = @transform_4, window_bounds = array<i64: 128, 128>}, {pipeline_mode = #tpu.pipeline_mode<synchronous>, transform_indices = @transform_5, window_bounds = array<i64: 128, 128>}, {pipeline_mode = #tpu.pipeline_mode<synchronous>, transform_indices = @transform_6, window_bounds = array<i64: 1, 128>}, {transform_indices = @transform_7, window_bounds = array<i64: 128, 256>}, {transform_indices = @transform_8, window_bounds = array<i64: 128, 128>}, {transform_indices = @transform_9, window_bounds = array<i64: 128, 128>}]} {
    %c128_i32 = arith.constant 128 : i32
    %0 = arith.muli %arg1, %c128_i32 : i32
    %1 = tpu.assume_multiple %0, 128 : i32
    %c128_i32_0 = arith.constant 128 : i32
    %2 = arith.muli %arg2, %c128_i32_0 : i32
    %3 = tpu.assume_multiple %2, 128 : i32
    %c0_i32 = arith.constant 0 : i32
    %4 = arith.cmpi eq, %arg0, %c0_i32 : i32
    %c0_i32_1 = arith.constant 0 : i32
    %5 = arith.cmpi eq, %arg1, %c0_i32_1 : i32
    %6 = arith.andi %4, %5 : i1
    %7 = arith.extui %6 : i1 to i32
    %c0_i32_2 = arith.constant 0 : i32
    %8 = arith.cmpi ne, %7, %c0_i32_2 : i32
    scf.if %8 {
      %c0 = arith.constant 0 : index
      %c0_18 = arith.constant 0 : index
      %c0_19 = arith.constant 0 : index
      %36 = vector.load %arg3[%c0, %c0_18, %c0_19] : memref<2x128x128xf32, #tpu.memory_space<vmem>>, vector<2x128x128xf32>
      %37 = vector.shape_cast %36 : vector<2x128x128xf32> to vector<256x128xf32>
      %c0_20 = arith.constant 0 : index
      %c0_21 = arith.constant 0 : index
      %38 = vector.load %arg6[%c0_20, %c0_21] : memref<128x128xf32, #tpu.memory_space<vmem>>, vector<128x128xf32>
      %cst = arith.constant dense<0.000000e+00> : vector<256x128xf32>
      %39 = tpu.matmul %37, %38, %cst {dimension_numbers = #tpu.dot_dimension_numbers<[1], [0], [0], [1], [0, 0, 1, 1], [], []>} : vector<256x128xf32>, vector<128x128xf32>, vector<256x128xf32> -> vector<256x128xf32>
      %40 = vector.extract_strided_slice %39 {offsets = [0, 0], sizes = [128, 128], strides = [1, 1]} : vector<256x128xf32> to vector<128x128xf32>
      %41 = arith.truncf %40 : vector<128x128xf32> to vector<128x128xbf16>
      %42 = arith.index_cast %3 : i32 to index
      %c0_22 = arith.constant 0 : index
      %43 = vector.load %arg13[%42, %c0_22] : memref<384x256xbf16, #tpu.memory_space<vmem>>, vector<128x128xbf16>
      tpu.vector_store %arg13[%42, %c0_22], %41 {strides = array<i32>} : memref<384x256xbf16, #tpu.memory_space<vmem>>, vector<128x128xbf16>,
      %44 = vector.extract_strided_slice %39 {offsets = [128, 0], sizes = [128, 128], strides = [1, 1]} : vector<256x128xf32> to vector<128x128xf32>
      %45 = arith.truncf %44 : vector<128x128xf32> to vector<128x128xbf16>
      %46 = arith.index_cast %3 : i32 to index
      %c128 = arith.constant 128 : index
      %47 = vector.load %arg13[%46, %c128] : memref<384x256xbf16, #tpu.memory_space<vmem>>, vector<128x128xbf16>
      tpu.vector_store %arg13[%46, %c128], %45 {strides = array<i32>} : memref<384x256xbf16, #tpu.memory_space<vmem>>, vector<128x128xbf16>,
    } else {
    }
    %c0_i32_3 = arith.constant 0 : i32
    %9 = arith.cmpi eq, %arg2, %c0_i32_3 : i32
    %10 = arith.extui %9 : i1 to i32
    %c0_i32_4 = arith.constant 0 : i32
    %11 = arith.cmpi ne, %10, %c0_i32_4 : i32
    scf.if %11 {
      %cst = arith.constant 0.000000e+00 : f32
      %36 = vector.broadcast %cst : f32 to vector<128x256xf32>
      %c0 = arith.constant 0 : index
      %c0_18 = arith.constant 0 : index
      %37 = vector.load %arg16[%c0, %c0_18] : memref<128x256xf32, #tpu.memory_space<vmem>>, vector<128x256xf32>
      tpu.vector_store %arg16[%c0, %c0_18], %36 {strides = array<i32>} : memref<128x256xf32, #tpu.memory_space<vmem>>, vector<128x256xf32>,
    } else {
    }
    %c0_i32_5 = arith.constant 0 : i32
    %12 = arith.cmpi eq, %arg0, %c0_i32_5 : i32
    %13 = arith.extui %12 : i1 to i32
    %c0_i32_6 = arith.constant 0 : i32
    %14 = arith.cmpi ne, %13, %c0_i32_6 : i32
    scf.if %14 {
      %c0 = arith.constant 0 : index
      %c0_18 = arith.constant 0 : index
      %36 = vector.load %arg16[%c0, %c0_18] : memref<128x256xf32, #tpu.memory_space<vmem>>, vector<128x256xf32>
      %c0_19 = arith.constant 0 : index
      %c0_20 = arith.constant 0 : index
      %37 = vector.load %arg4[%c0_19, %c0_20] : memref<128x128xbf16, #tpu.memory_space<vmem>>, vector<128x128xbf16>
      %38 = arith.index_cast %3 : i32 to index
      %c0_21 = arith.constant 0 : index
      %39 = vector.load %arg13[%38, %c0_21] : memref<384x256xbf16, #tpu.memory_space<vmem>>, vector<128x256xbf16>
      %cst = arith.constant dense<0.000000e+00> : vector<128x256xf32>
      %40 = tpu.matmul %37, %39, %cst {dimension_numbers = #tpu.dot_dimension_numbers<[1], [0], [0], [1], [0, 0, 1, 1], [], []>} : vector<128x128xbf16>, vector<128x256xbf16>, vector<128x256xf32> -> vector<128x256xf32>
      %41 = arith.addf %36, %40 : vector<128x256xf32>
      %c0_22 = arith.constant 0 : index
      %c0_23 = arith.constant 0 : index
      %42 = vector.load %arg16[%c0_22, %c0_23] : memref<128x256xf32, #tpu.memory_space<vmem>>, vector<128x256xf32>
      tpu.vector_store %arg16[%c0_22, %c0_23], %41 {strides = array<i32>} : memref<128x256xf32, #tpu.memory_space<vmem>>, vector<128x256xf32>,
    } else {
    }
    %c1_i32 = arith.constant 1 : i32
    %15 = arith.cmpi eq, %arg0, %c1_i32 : i32
    %16 = arith.extui %15 : i1 to i32
    %c0_i32_7 = arith.constant 0 : i32
    %17 = arith.cmpi ne, %16, %c0_i32_7 : i32
    scf.if %17 {
      %c0 = arith.constant 0 : index
      %c0_18 = arith.constant 0 : index
      %36 = vector.load %arg16[%c0, %c0_18] : memref<128x256xf32, #tpu.memory_space<vmem>>, vector<128x256xf32>
      %c0_19 = arith.constant 0 : index
      %c0_20 = arith.constant 0 : index
      %37 = vector.load %arg4[%c0_19, %c0_20] : memref<128x128xbf16, #tpu.memory_space<vmem>>, vector<128x128xbf16>
      %38 = arith.index_cast %3 : i32 to index
      %c0_21 = arith.constant 0 : index
      %39 = vector.load %arg14[%38, %c0_21] : memref<384x256xbf16, #tpu.memory_space<vmem>>, vector<128x256xbf16>
      %cst = arith.constant dense<0.000000e+00> : vector<128x256xf32>
      %40 = tpu.matmul %37, %39, %cst {dimension_numbers = #tpu.dot_dimension_numbers<[1], [0], [0], [1], [0, 0, 1, 1], [], []>} : vector<128x128xbf16>, vector<128x256xbf16>, vector<128x256xf32> -> vector<128x256xf32>
      %41 = arith.addf %36, %40 : vector<128x256xf32>
      %c0_22 = arith.constant 0 : index
      %c0_23 = arith.constant 0 : index
      %42 = vector.load %arg16[%c0_22, %c0_23] : memref<128x256xf32, #tpu.memory_space<vmem>>, vector<128x256xf32>
      tpu.vector_store %arg16[%c0_22, %c0_23], %41 {strides = array<i32>} : memref<128x256xf32, #tpu.memory_space<vmem>>, vector<128x256xf32>,
    } else {
    }
    %c2_i32 = arith.constant 2 : i32
    %18 = arith.cmpi eq, %arg0, %c2_i32 : i32
    %19 = arith.extui %18 : i1 to i32
    %c0_i32_8 = arith.constant 0 : i32
    %20 = arith.cmpi ne, %19, %c0_i32_8 : i32
    scf.if %20 {
      %c0 = arith.constant 0 : index
      %c0_18 = arith.constant 0 : index
      %36 = vector.load %arg16[%c0, %c0_18] : memref<128x256xf32, #tpu.memory_space<vmem>>, vector<128x128xf32>
      %c0_19 = arith.constant 0 : index
      %c0_20 = arith.constant 0 : index
      %37 = vector.load %arg5[%c0_19, %c0_20] : memref<128x128xbf16, #tpu.memory_space<vmem>>, vector<128x128xbf16>
      %38 = arith.index_cast %3 : i32 to index
      %c0_21 = arith.constant 0 : index
      %39 = vector.load %arg15[%38, %c0_21] : memref<384x128xbf16, #tpu.memory_space<vmem>>, vector<128x128xbf16>
      %cst = arith.constant dense<0.000000e+00> : vector<128x128xf32>
      %40 = tpu.matmul %37, %39, %cst {dimension_numbers = #tpu.dot_dimension_numbers<[1], [0], [0], [1], [0, 0, 1, 1], [], []>} : vector<128x128xbf16>, vector<128x128xbf16>, vector<128x128xf32> -> vector<128x128xf32>
      %41 = arith.addf %36, %40 : vector<128x128xf32>
      %c0_22 = arith.constant 0 : index
      %c0_23 = arith.constant 0 : index
      %42 = vector.load %arg16[%c0_22, %c0_23] : memref<128x256xf32, #tpu.memory_space<vmem>>, vector<128x128xf32>
      tpu.vector_store %arg16[%c0_22, %c0_23], %41 {strides = array<i32>} : memref<128x256xf32, #tpu.memory_space<vmem>>, vector<128x128xf32>,
    } else {
    }
    %c0_i32_9 = arith.constant 0 : i32
    %21 = arith.cmpi eq, %arg0, %c0_i32_9 : i32
    %c2_i32_10 = arith.constant 2 : i32
    %22 = arith.cmpi eq, %arg2, %c2_i32_10 : i32
    %23 = arith.andi %21, %22 : i1
    %24 = arith.extui %23 : i1 to i32
    %c0_i32_11 = arith.constant 0 : i32
    %25 = arith.cmpi ne, %24, %c0_i32_11 : i32
    scf.if %25 {
      %c0 = arith.constant 0 : index
      %c0_18 = arith.constant 0 : index
      %36 = vector.load %arg16[%c0, %c0_18] : memref<128x256xf32, #tpu.memory_space<vmem>>, vector<128x256xf32>
      %37 = arith.truncf %36 : vector<128x256xf32> to vector<128x256xbf16>
      %c0_19 = arith.constant 0 : index
      %c0_20 = arith.constant 0 : index
      %38 = vector.load %arg10[%c0_19, %c0_20] : memref<128x256xbf16, #tpu.memory_space<vmem>>, vector<128x256xbf16>
      tpu.vector_store %arg10[%c0_19, %c0_20], %37 {strides = array<i32>} : memref<128x256xbf16, #tpu.memory_space<vmem>>, vector<128x256xbf16>,
      %c0_21 = arith.constant 0 : index
      %c0_22 = arith.constant 0 : index
      %39 = vector.load %arg7[%c0_21, %c0_22] : memref<128x128xf32, #tpu.memory_space<vmem>>, vector<128x128xf32>
      %40 = vector.extract_strided_slice %36 {offsets = [0, 0], sizes = [128, 128], strides = [1, 1]} : vector<128x256xf32> to vector<128x128xf32>
      %cst = arith.constant dense<0.000000e+00> : vector<128x128xf32>
      %41 = tpu.matmul %40, %39, %cst {dimension_numbers = #tpu.dot_dimension_numbers<[1], [0], [0], [1], [0, 0, 1, 1], [], []>} : vector<128x128xf32>, vector<128x128xf32>, vector<128x128xf32> -> vector<128x128xf32>
      %42 = arith.truncf %41 : vector<128x128xf32> to vector<128x128xbf16>
      %43 = arith.index_cast %1 : i32 to index
      %c0_23 = arith.constant 0 : index
      %44 = vector.load %arg14[%43, %c0_23] : memref<384x256xbf16, #tpu.memory_space<vmem>>, vector<128x128xbf16>
      tpu.vector_store %arg14[%43, %c0_23], %42 {strides = array<i32>} : memref<384x256xbf16, #tpu.memory_space<vmem>>, vector<128x128xbf16>,
      %45 = vector.extract_strided_slice %36 {offsets = [0, 128], sizes = [128, 128], strides = [1, 1]} : vector<128x256xf32> to vector<128x128xf32>
      %cst_24 = arith.constant dense<0.000000e+00> : vector<128x128xf32>
      %46 = tpu.matmul %45, %39, %cst_24 {dimension_numbers = #tpu.dot_dimension_numbers<[1], [0], [0], [1], [0, 0, 1, 1], [], []>} : vector<128x128xf32>, vector<128x128xf32>, vector<128x128xf32> -> vector<128x128xf32>
      %47 = arith.truncf %46 : vector<128x128xf32> to vector<128x128xbf16>
      %48 = arith.index_cast %1 : i32 to index
      %c128 = arith.constant 128 : index
      %49 = vector.load %arg14[%48, %c128] : memref<384x256xbf16, #tpu.memory_space<vmem>>, vector<128x128xbf16>
      tpu.vector_store %arg14[%48, %c128], %47 {strides = array<i32>} : memref<384x256xbf16, #tpu.memory_space<vmem>>, vector<128x128xbf16>,
    } else {
    }
    %c1_i32_12 = arith.constant 1 : i32
    %26 = arith.cmpi eq, %arg0, %c1_i32_12 : i32
    %c2_i32_13 = arith.constant 2 : i32
    %27 = arith.cmpi eq, %arg2, %c2_i32_13 : i32
    %28 = arith.andi %26, %27 : i1
    %29 = arith.extui %28 : i1 to i32
    %c0_i32_14 = arith.constant 0 : i32
    %30 = arith.cmpi ne, %29, %c0_i32_14 : i32
    scf.if %30 {
      %c0 = arith.constant 0 : index
      %c0_18 = arith.constant 0 : index
      %36 = vector.load %arg16[%c0, %c0_18] : memref<128x256xf32, #tpu.memory_space<vmem>>, vector<128x256xf32>
      %37 = vector.extract_strided_slice %36 {offsets = [0, 0], sizes = [128, 128], strides = [1, 1]} : vector<128x256xf32> to vector<128x128xf32>
      %38 = arith.truncf %37 : vector<128x128xf32> to vector<128x128xbf16>
      %c0_19 = arith.constant 0 : index
      %c0_20 = arith.constant 0 : index
      %39 = vector.load %arg11[%c0_19, %c0_20] : memref<128x128xbf16, #tpu.memory_space<vmem>>, vector<128x128xbf16>
      tpu.vector_store %arg11[%c0_19, %c0_20], %38 {strides = array<i32>} : memref<128x128xbf16, #tpu.memory_space<vmem>>, vector<128x128xbf16>,
      %40 = vector.extract_strided_slice %36 {offsets = [0, 128], sizes = [128, 128], strides = [1, 1]} : vector<128x256xf32> to vector<128x128xf32>
      %c0_21 = arith.constant 0 : index
      %c0_22 = arith.constant 0 : index
      %41 = vector.load %arg8[%c0_21, %c0_22] : memref<128x128xf32, #tpu.memory_space<vmem>>, vector<128x128xf32>
      %cst = arith.constant dense<0.000000e+00> : vector<128x128xf32>
      %42 = tpu.matmul %40, %41, %cst {dimension_numbers = #tpu.dot_dimension_numbers<[1], [0], [0], [1], [0, 0, 1, 1], [], []>} : vector<128x128xf32>, vector<128x128xf32>, vector<128x128xf32> -> vector<128x128xf32>
      %43 = arith.truncf %42 : vector<128x128xf32> to vector<128x128xbf16>
      %44 = arith.index_cast %1 : i32 to index
      %c0_23 = arith.constant 0 : index
      %45 = vector.load %arg15[%44, %c0_23] : memref<384x128xbf16, #tpu.memory_space<vmem>>, vector<128x128xbf16>
      tpu.vector_store %arg15[%44, %c0_23], %43 {strides = array<i32>} : memref<384x128xbf16, #tpu.memory_space<vmem>>, vector<128x128xbf16>,
    } else {
    }
    %c2_i32_15 = arith.constant 2 : i32
    %31 = arith.cmpi eq, %arg0, %c2_i32_15 : i32
    %c2_i32_16 = arith.constant 2 : i32
    %32 = arith.cmpi eq, %arg2, %c2_i32_16 : i32
    %33 = arith.andi %31, %32 : i1
    %34 = arith.extui %33 : i1 to i32
    %c0_i32_17 = arith.constant 0 : i32
    %35 = arith.cmpi ne, %34, %c0_i32_17 : i32
    scf.if %35 {
      %c0 = arith.constant 0 : index
      %c0_18 = arith.constant 0 : index
      %36 = vector.load %arg16[%c0, %c0_18] : memref<128x256xf32, #tpu.memory_space<vmem>>, vector<128x128xf32>
      %c0_19 = arith.constant 0 : index
      %c0_20 = arith.constant 0 : index
      %37 = vector.load %arg9[%c0_19, %c0_20] : memref<1x128xf32, #tpu.memory_space<vmem>>, vector<1x128xf32>
      %38 = vector.broadcast %37 : vector<1x128xf32> to vector<128x128xf32>
      %39 = arith.addf %36, %38 : vector<128x128xf32>
      %40 = arith.truncf %39 : vector<128x128xf32> to vector<128x128xbf16>
      %c0_21 = arith.constant 0 : index
      %c0_22 = arith.constant 0 : index
      %41 = vector.load %arg12[%c0_21, %c0_22] : memref<128x128xbf16, #tpu.memory_space<vmem>>, vector<128x128xbf16>
      tpu.vector_store %arg12[%c0_21, %c0_22], %40 {strides = array<i32>} : memref<128x128xbf16, #tpu.memory_space<vmem>>, vector<128x128xbf16>,
    } else {
    }
    return
  }
  func.func @transform_0(%arg0: i32, %arg1: i32, %arg2: i32) -> (i32, i32, i32) {
    %c0_i32 = arith.constant 0 : i32
    %0 = arith.cmpi eq, %arg0, %c0_i32 : i32
    %c0_i32_0 = arith.constant 0 : i32
    %1 = arith.cmpi eq, %arg1, %c0_i32_0 : i32
    %2 = arith.andi %0, %1 : i1
    %c2_i32 = arith.constant 2 : i32
    %3 = arith.select %2, %arg2, %c2_i32 : i32
    %c0_i32_1 = arith.constant 0 : i32
    %c0_i32_2 = arith.constant 0 : i32
    %c0_i32_3 = arith.constant 0 : i32
    return %c0_i32_1, %3, %c0_i32_2 : i32, i32, i32
  }
  func.func @transform_1(%arg0: i32, %arg1: i32, %arg2: i32) -> (i32, i32) {
    %c1_i32 = arith.constant 1 : i32
    %0 = arith.cmpi sle, %arg0, %c1_i32 : i32
    %c2_i32 = arith.constant 2 : i32
    %1 = arith.select %0, %arg1, %c2_i32 : i32
    %c2_i32_0 = arith.constant 2 : i32
    %2 = arith.select %0, %arg2, %c2_i32_0 : i32
    %c0_i32 = arith.constant 0 : i32
    return %1, %2 : i32, i32
  }
  func.func @transform_2(%arg0: i32, %arg1: i32, %arg2: i32) -> (i32, i32) {
    %c2_i32 = arith.constant 2 : i32
    %0 = arith.cmpi eq, %arg0, %c2_i32 : i32
    %c0_i32 = arith.constant 0 : i32
    %1 = arith.select %0, %arg1, %c0_i32 : i32
    %c0_i32_0 = arith.constant 0 : i32
    %2 = arith.select %0, %arg2, %c0_i32_0 : i32
    %c0_i32_1 = arith.constant 0 : i32
    return %1, %2 : i32, i32
  }
  func.func @transform_3(%arg0: i32, %arg1: i32, %arg2: i32) -> (i32, i32) {
    %c0_i32 = arith.constant 0 : i32
    %c0_i32_0 = arith.constant 0 : i32
    %c0_i32_1 = arith.constant 0 : i32
    return %c0_i32, %c0_i32_0 : i32, i32
  }
  func.func @transform_4(%arg0: i32, %arg1: i32, %arg2: i32) -> (i32, i32) {
    %c0_i32 = arith.constant 0 : i32
    %c0_i32_0 = arith.constant 0 : i32
    %c0_i32_1 = arith.constant 0 : i32
    return %c0_i32, %c0_i32_0 : i32, i32
  }
  func.func @transform_5(%arg0: i32, %arg1: i32, %arg2: i32) -> (i32, i32) {
    %c0_i32 = arith.constant 0 : i32
    %c0_i32_0 = arith.constant 0 : i32
    %c0_i32_1 = arith.constant 0 : i32
    return %c0_i32, %c0_i32_0 : i32, i32
  }
  func.func @transform_6(%arg0: i32, %arg1: i32, %arg2: i32) -> (i32, i32) {
    %c0_i32 = arith.constant 0 : i32
    %c0_i32_0 = arith.constant 0 : i32
    %c0_i32_1 = arith.constant 0 : i32
    return %c0_i32, %c0_i32_0 : i32, i32
  }
  func.func @transform_7(%arg0: i32, %arg1: i32, %arg2: i32) -> (i32, i32) {
    %c0_i32 = arith.constant 0 : i32
    %0 = arith.cmpi slt, %arg0, %c0_i32 : i32
    %c0_i32_0 = arith.constant 0 : i32
    %1 = arith.cmpi sgt, %arg0, %c0_i32_0 : i32
    %c2_i32 = arith.constant 2 : i32
    %2 = arith.select %1, %c2_i32, %arg1 : i32
    %c0_i32_1 = arith.constant 0 : i32
    %3 = arith.select %0, %c0_i32_1, %2 : i32
    %c0_i32_2 = arith.constant 0 : i32
    %c0_i32_3 = arith.constant 0 : i32
    return %3, %c0_i32_2 : i32, i32
  }
  func.func @transform_8(%arg0: i32, %arg1: i32, %arg2: i32) -> (i32, i32) {
    %c1_i32 = arith.constant 1 : i32
    %0 = arith.cmpi slt, %arg0, %c1_i32 : i32
    %c1_i32_0 = arith.constant 1 : i32
    %1 = arith.cmpi sgt, %arg0, %c1_i32_0 : i32
    %c2_i32 = arith.constant 2 : i32
    %2 = arith.select %1, %c2_i32, %arg1 : i32
    %c0_i32 = arith.constant 0 : i32
    %3 = arith.select %0, %c0_i32, %2 : i32
    %c0_i32_1 = arith.constant 0 : i32
    %c0_i32_2 = arith.constant 0 : i32
    return %3, %c0_i32_1 : i32, i32
  }
  func.func @transform_9(%arg0: i32, %arg1: i32, %arg2: i32) -> (i32, i32) {
    %c2_i32 = arith.constant 2 : i32
    %0 = arith.cmpi slt, %arg0, %c2_i32 : i32
    %c2_i32_0 = arith.constant 2 : i32
    %1 = arith.cmpi sgt, %arg0, %c2_i32_0 : i32
    %c2_i32_1 = arith.constant 2 : i32
    %2 = arith.select %1, %c2_i32_1, %arg1 : i32
    %c0_i32 = arith.constant 0 : i32
    %3 = arith.select %0, %c0_i32, %2 : i32
    %c0_i32_2 = arith.constant 0 : i32
    %c0_i32_3 = arith.constant 0 : i32
    return %3, %c0_i32_2 : i32, i32
  }
}

</mosaic_0001>

<bundles_post_ra>
// kernel: _forward_padded.1
= control target key start
LH: loop header
LB: loop body
LE: loop exit
PB: predicated region body
PF: predicated region fallthrough
CT: control target
= control target key end

     0   :  { %s5272_s0 = inlined_call_operand.vmem [shape: f32[2,384,128], index: 0, kind: input, shape index: {}]   ;;  %s5273_s1 = inlined_call_operand.vmem [shape: bf16[384,384], index: 1, kind: input, shape index: {}]   ;;  %s5274_s2 = inlined_call_operand.vmem [shape: bf16[384,384], index: 2, kind: input, shape index: {}]   ;;  %s5275_s3 = inlined_call_operand.vmem [shape: f32[128,128], index: 3, kind: input, shape index: {}]   ;;  %s5276_s4 = inlined_call_operand.vmem [shape: f32[128,128], index: 4, kind: input, shape index: {}]   ;;  %s5277_s5 = inlined_call_operand.vmem [shape: f32[128,128], index: 5, kind: input, shape index: {}]   ;;  %s5278_s6 = inlined_call_operand.vmem [shape: f32[1,128], index: 6, kind: input, shape index: {}]   ;;  %s5279_s7 = inlined_call_operand.vmem [shape: bf16[384,256], index: 7, kind: output, shape index: {0}]   ;;  %s5280_s8 = inlined_call_operand.vmem [shape: bf16[384,128], index: 8, kind: output, shape index: {1}]   ;;  %s5281_s9 = inlined_call_operand.vmem [shape: bf16[384,128], index: 9, kind: output, shape index: {2}]  }
   0x1   :  { %5294 = sst [smem:[#allocation16_spill]] %s5272_s0 }
   0x2   :  { %5295 = sst [smem:[#allocation17_spill]] %s5273_s1 }
   0x3   :  { %5296 = sst [smem:[#allocation18_spill]] %s5274_s2 }
   0x4   :  { %5297 = sst [smem:[#allocation19_spill]] %s5275_s3 }
   0x5   :  { %5298 = sst [smem:[#allocation20_spill]] %s5276_s4 }
   0x6   :  { %5299 = sst [smem:[#allocation21_spill]] %s5277_s5 }
   0x7   :  { %5300 = sst [smem:[#allocation22_spill]] %s5278_s6 }
   0x8   :  { %5301 = sst [smem:[#allocation23_spill]] %s5279_s7 }
   0x9   :  { %5302 = sst [smem:[#allocation24_spill]] %s5280_s8 }
   0xa   :  { %5303 = sst [smem:[#allocation25_spill]] %s5281_s9 }
   0xb   :  { %s4431_s30 = smov 0   ;;  %s4433_s10 = smov 0  }
   0xc   :  { %s4435_s11 = smov 0   ;;  %s4437_s12 = smov 0  }
   0xd   :  { %s4439_s13 = smov 0   ;;  %s4441_s14 = smov 0  }
   0xe   :  { %s4443_s15 = smov 0   ;;  %s4445_s16 = smov 0  }
   0xf   :  { %s4447_s17 = smov 0   ;;  %s4449_s18 = smov 0  }
  0x10   :  { %s4451_s19 = smov 0   ;;  %s4453_s20 = smov 0  }
  0x11   :  { %s4455_s21 = smov 0  }
  0x12 LB: > { %5304 = sst [smem:[#allocation9_spill]] %s4336_s11  ;;  %s32_s22 = sadd.s32 1, %s4364_s18  ;;  %s4376_s21 = sphi %s4455_s21, %s20_s21   ;;  %s4372_s20 = sphi %s4453_s20, %s5358_s20   ;;  %s4368_s19 = sphi %s4451_s19, %s5357_s19   ;;  %s4364_s18 = sphi %s4449_s18, %s5356_s18   ;;  %s4360_s17 = sphi %s4447_s17, %s5355_s17   ;;  %s4356_s16 = sphi %s4445_s16, %s5354_s16   ;;  %s4352_s15 = sphi %s4443_s15, %s5353_s15   ;;  %s4348_s14 = sphi %s4441_s14, %s5352_s14   ;;  %s4344_s13 = sphi %s4439_s13, %s5351_s13   ;;  %s4340_s12 = sphi %s4437_s12, %s5350_s12   ;;  %s4336_s11 = sphi %s4435_s11, %s5349_s11   ;;  %s4332_s10 = sphi %s4433_s10, %s5348_s10   ;;  %s4328_s30 = sphi %s4431_s30, %s5347_s30  }
  0x13   : > { %5305 = sst [smem:[#allocation10_spill]] %s4344_s13  ;;  %s35_s23 = sadd.s32 1, %s4368_s19 }
  0x14   : > { %5306 = sst [smem:[#allocation11_spill]] %s4352_s15  ;;  %p33_p0 = scmp.ge.s32.totalorder %s32_s22, 3 }
  0x15   : > { %5307 = sst [smem:[#allocation12_spill]] %s4356_s16  ;;  %s39_s24 = sadd.s32 1, %s4372_s20 }
  0x16   : > { %5308 = sst [smem:[#allocation13_spill]] %s4360_s17  ;;  %p43_p1 = scmp.eq.s32.totalorder %s4372_s20, 0 }
  0x17   : > { %p44_p2 = scmp.eq.s32.totalorder %s4368_s19, 0  ;;  %s5360_s22 = smov (%p33_p0, %s32_s22), 0 }
  0x18   : > { %s5362_s23 = smov (!%p33_p0, %s35_s23), %s4368_s19  ;;  %s56_s25 = sadd.s32 1, %s4348_s14 }
  0x19   : > { %p45_p3 = pnand %p44_p2, %p43_p1  ;;  %p37_p4 = scmp.ge.s32.totalorder %s5362_s23, 3 }
  0x1a   : > { %p63_p5 = scmp.ne.s32.totalorder %s4348_s14, %s4344_s13  ;;  %p64_p7 = scmp.eq.s32.totalorder %s4376_s21, 0 }
  0x1b   : > { %s4508_s26 = scalar_select %p45_p3, 2, %s4364_s18 }
  0x1c   : > { %s5364_s23 = smov (%p37_p4, %s5362_s23), 0  ;;  %s5366_s24 = smov (!%p37_p4, %s39_s24), %s4372_s20 }
  0x1d   : > { %5309 = sst [smem:[#allocation14_spill]] %s5364_s23  ;;  %p49_p6 = scmp.eq.s32.totalorder %s5364_s23, 0 }
  0x1e   : > { %p41_p8 = scmp.ge.s32.totalorder %s5366_s24, 3  ;;  %p79_p9 = scmp.le.s32.totalorder %s4372_s20, 1 }
  0x1f   : > { %p4518_p10 = por %p64_p7, %p63_p5  ;;  %s90_s28 = sadd.s32 1, %s4340_s12 }
  0x20   : > { %s5368_s24 = smov (%p41_p8, %s5366_s24), 0  ;;  %p97_p0 = scmp.ne.s32.totalorder %s4340_s12, %s4336_s11 }
  0x21   : > { %5311 = sst [smem:[#allocation15_spill]] %s5368_s24  ;;  %p48_p11 = scmp.eq.s32.totalorder %s5368_s24, 0 }
  0x22   : > { %s4526_s29 = scalar_select %p79_p9, %s4368_s19, 2 }
  0x23   : > { %p82_p12 = scmp.le.s32.totalorder %s5368_s24, 1  ;;  %p50_p13 = pnand %p49_p6, %p48_p11 }
  0x24   : > { %s4531_s6 = scalar_select %p79_p9, %s4364_s18, 2 }
  0x25   : > { %s83_s5 = scalar_select %p82_p12, %s5364_s23, 2 }
  0x26   : > { %s3228_s4 = scalar_select %p50_p13, 2, %s5360_s22 }
  0x27   : > { %s84_s3 = scalar_select %p82_p12, %s5360_s22, 2 }
  0x28   : > { %s53_s9 = ssub.s32 %s4508_s26, %s3228_s4  ;;  %s85_s8 = ssub.s32 %s4526_s29, %s83_s5 }
  0x29   : > { %p54_p1 = scmp.eq.s32.totalorder %s53_s9, 0  ;;  %s86_s7 = ssub.s32 %s4531_s6, %s84_s3 }
  0x2a   : > { %s87_s15 = sor.u32 %s86_s7, %s85_s8  ;;  %p4543_p2 = por %p97_p0, %p64_p7 }
  0x2b   : > { %s4548_s17 = scalar_select %p54_p1, %s4348_s14, %s56_s25  }
  0x2c   : > { %p88_p3 = scmp.eq.s32.totalorder %s87_s15, 0  ;;  %p113_p4 = scmp.eq.s32.totalorder %s4372_s20, 2 }
  0x2d   : > { %p116_p5 = scmp.eq.s32.totalorder %s5368_s24, 2  ;;  %p131_p6 = scmp.ne.s32.totalorder %s4332_s10, %s4328_s30 }
  0x2e   : > { %s4553_s4 = scalar_select %p88_p3, %s4340_s12, %s90_s28  }
  0x2f   : > { %s4556_s11 = scalar_select %p113_p4, %s4368_s19, 0 }
  0x30   : > { %s4559_s5 = scalar_select %p113_p4, %s4364_s18, 0 }
  0x31   : > { %s117_s3 = scalar_select %p116_p5, %s5364_s23, 0 }
  0x32   : > { %s118_s7 = scalar_select %p116_p5, %s5360_s22, 0 }
  0x33   : > { %s119_s8 = ssub.s32 %s4556_s11, %s117_s3  ;;  %s124_s13 = sadd.s32 1, %s4332_s10 }
  0x34   : > { %s120_s9 = ssub.s32 %s4559_s5, %s118_s7  ;;  %p4570_p8 = por %p131_p6, %p64_p7 }
  0x35   : > { %s121_s25 = sor.u32 %s120_s9, %s119_s8  ;;  %p3230_p11 = scmp.ge.s32.totalorder %s4376_s21, 27 }
  0x36   : > { %p122_p9 = scmp.eq.s32.totalorder %s121_s25, 0 }
  0x37   : > { %355 = sbr.rel (%p3230_p11) target bundleno = 128 (0x80), region = 32 }
  0x38   : > { %s4575_s28 = scalar_select %p122_p9, %s4332_s10, %s124_s13  }
  0x3e   : > { %358 = sbr.rel (!%p4518_p10) target bundleno = 88 (0x58), region = 36  ;;  %s360_s3 = sand.u32 (%p4518_p10), 1, %s4348_s14  }
  0x3f   : > { %s3345_s7 = sshll.u32 (%p4518_p10), %s4508_s26, 7  ;;  %s3231_s24 = sshll.u32 (%p4518_p10), %s360_s3, 8 }
  0x40   : > { %s5314_s0 = sld [smem:[#allocation16_spill]] (%p4518_p10)  ;;  %s4590_s13 = scalar_lea.vmem (%p4518_p10), [#allocation6], %s3231_s24 }
  0x46   : > { %s4585_s23 = scalar_lea.vmem %s5314_s0, %s3345_s7 }
  0x47   : > { %v460_v0 = vld [vmem:[%s4585_s23] sm:$0xff]  ;;  %v462_v1 = vld [vmem:[%s4585_s23 + $0x8] sm:$0xff]  ;;  %v464_v2 = vld [vmem:[%s4585_s23 + $0x10] sm:$0xff] }
  0x48   : > { %461 = vst [vmem:[%s4590_s13] sm:$0xff] %v460_v0  ;;  %463 = vst [vmem:[%s4590_s13 + $0x8] sm:$0xff] %v462_v1  ;;  %v466_v3 = vld [vmem:[%s4585_s23 + $0x18] sm:$0xff]  ;;  %v468_v4 = vld [vmem:[%s4585_s23 + $0x20] sm:$0xff] }
  0x49   : > { %465 = vst [vmem:[%s4590_s13 + $0x10] sm:$0xff] %v464_v2  ;;  %v470_v5 = vld [vmem:[%s4585_s23 + $0x28] sm:$0xff]  ;;  %467 = vst [vmem:[%s4590_s13 + $0x18] sm:$0xff] %v466_v3  ;;  %v472_v6 = vld [vmem:[%s4585_s23 + $0x30] sm:$0xff] }
  0x4a   : > { %469 = vst [vmem:[%s4590_s13 + $0x20] sm:$0xff] %v468_v4  ;;  %471 = vst [vmem:[%s4590_s13 + $0x28] sm:$0xff] %v470_v5  ;;  %v474_v7 = vld [vmem:[%s4585_s23 + $0x38] sm:$0xff]  ;;  %v476_v8 = vld [vmem:[%s4585_s23 + $0x40] sm:$0xff] }
  0x4b   : > { %473 = vst [vmem:[%s4590_s13 + $0x30] sm:$0xff] %v472_v6  ;;  %475 = vst [vmem:[%s4590_s13 + $0x38] sm:$0xff] %v474_v7  ;;  %v478_v9 = vld [vmem:[%s4585_s23 + $0x48] sm:$0xff]  ;;  %v480_v10 = vld [vmem:[%s4585_s23 + $0x50] sm:$0xff] }
  0x4c   : > { %477 = vst [vmem:[%s4590_s13 + $0x40] sm:$0xff] %v476_v8  ;;  %v482_v11 = vld [vmem:[%s4585_s23 + $0x58] sm:$0xff]  ;;  %479 = vst [vmem:[%s4590_s13 + $0x48] sm:$0xff] %v478_v9  ;;  %v484_v12 = vld [vmem:[%s4585_s23 + $0x60] sm:$0xff] }
  0x4d   : > { %481 = vst [vmem:[%s4590_s13 + $0x50] sm:$0xff] %v480_v10  ;;  %483 = vst [vmem:[%s4590_s13 + $0x58] sm:$0xff] %v482_v11  ;;  %v486_v13 = vld [vmem:[%s4585_s23 + $0x68] sm:$0xff]  ;;  %v488_v14 = vld [vmem:[%s4585_s23 + $0x70] sm:$0xff] }
  0x4e   : > { %485 = vst [vmem:[%s4590_s13 + $0x60] sm:$0xff] %v484_v12  ;;  %487 = vst [vmem:[%s4590_s13 + $0x68] sm:$0xff] %v486_v13  ;;  %v490_v15 = vld [vmem:[%s4585_s23 + $0x78] sm:$0xff]  ;;  %v492_v16 = vld [vmem:[%s4585_s23 + $0x180] sm:$0xff] }
  0x4f   : > { %489 = vst [vmem:[%s4590_s13 + $0x70] sm:$0xff] %v488_v14  ;;  %v494_v17 = vld [vmem:[%s4585_s23 + $0x188] sm:$0xff]  ;;  %491 = vst [vmem:[%s4590_s13 + $0x78] sm:$0xff] %v490_v15  ;;  %v496_v18 = vld [vmem:[%s4585_s23 + $0x190] sm:$0xff] }
  0x50   : > { %493 = vst [vmem:[%s4590_s13 + $0x80] sm:$0xff] %v492_v16  ;;  %495 = vst [vmem:[%s4590_s13 + $0x88] sm:$0xff] %v494_v17  ;;  %v498_v19 = vld [vmem:[%s4585_s23 + $0x198] sm:$0xff]  ;;  %v500_v20 = vld [vmem:[%s4585_s23 + $0x1a0] sm:$0xff] }
  0x51   : > { %497 = vst [vmem:[%s4590_s13 + $0x90] sm:$0xff] %v496_v18  ;;  %499 = vst [vmem:[%s4590_s13 + $0x98] sm:$0xff] %v498_v19  ;;  %v502_v21 = vld [vmem:[%s4585_s23 + $0x1a8] sm:$0xff]  ;;  %v504_v22 = vld [vmem:[%s4585_s23 + $0x1b0] sm:$0xff] }
  0x52   : > { %501 = vst [vmem:[%s4590_s13 + $0xa0] sm:$0xff] %v500_v20  ;;  %v506_v23 = vld [vmem:[%s4585_s23 + $0x1b8] sm:$0xff]  ;;  %503 = vst [vmem:[%s4590_s13 + $0xa8] sm:$0xff] %v502_v21  ;;  %v508_v24 = vld [vmem:[%s4585_s23 + $0x1c0] sm:$0xff] }
  0x53   : > { %505 = vst [vmem:[%s4590_s13 + $0xb0] sm:$0xff] %v504_v22  ;;  %507 = vst [vmem:[%s4590_s13 + $0xb8] sm:$0xff] %v506_v23  ;;  %v510_v25 = vld [vmem:[%s4585_s23 + $0x1c8] sm:$0xff]  ;;  %v512_v26 = vld [vmem:[%s4585_s23 + $0x1d0] sm:$0xff] }
  0x54   : > { %509 = vst [vmem:[%s4590_s13 + $0xc0] sm:$0xff] %v508_v24  ;;  %511 = vst [vmem:[%s4590_s13 + $0xc8] sm:$0xff] %v510_v25  ;;  %v514_v27 = vld [vmem:[%s4585_s23 + $0x1d8] sm:$0xff]  ;;  %v516_v28 = vld [vmem:[%s4585_s23 + $0x1e0] sm:$0xff] }
  0x55   : > { %513 = vst [vmem:[%s4590_s13 + $0xd0] sm:$0xff] %v512_v26  ;;  %v518_v29 = vld [vmem:[%s4585_s23 + $0x1e8] sm:$0xff]  ;;  %515 = vst [vmem:[%s4590_s13 + $0xd8] sm:$0xff] %v514_v27  ;;  %v520_v30 = vld [vmem:[%s4585_s23 + $0x1f0] sm:$0xff] }
  0x56   : > { %517 = vst [vmem:[%s4590_s13 + $0xe0] sm:$0xff] %v516_v28  ;;  %519 = vst [vmem:[%s4590_s13 + $0xe8] sm:$0xff] %v518_v29  ;;  %v522_v31 = vld [vmem:[%s4585_s23 + $0x1f8] sm:$0xff] }
  0x57   : > { %521 = vst [vmem:[%s4590_s13 + $0xf0] sm:$0xff] %v520_v30  ;;  %523 = vst [vmem:[%s4590_s13 + $0xf8] sm:$0xff] %v522_v31 }
  0x58 PF: > { %529 = sbr.rel (!%p4543_p2) target bundleno = 108 (0x6c), region = 74  ;;  %s531_s24 = sand.u32 (%p4543_p2), 1, %s4340_s12  }
  0x59   : > { %s4141_s26 = smul.u32 (%p4543_p2), 48, %s4526_s29  ;;  %s3235_s27 = sshll.u32 (%p4543_p2), %s531_s24, 6 }
  0x5a   : > { %s5315_s1 = sld [smem:[#allocation17_spill]] (%p4543_p2)  ;;  %s533_s16 = scalar_lea.vmem (%p4543_p2), [#allocation7], %s3235_s27 }
  0x5b   : > { %s539_s25 = sadd.s32 (%p4543_p2), %s4141_s26, %s4531_s6 }
  0x5c   : > { %s3238_s3 = sshll.u32 (%p4543_p2), %s539_s25, 2 }
  0x60   : > { %s4661_s9 = scalar_lea.vmem %s5315_s1, %s3238_s3 }
  0x61   : > { %v557_v32 = vld [vmem:[%s4661_s9] sm:$0xf]  ;;  %v559_v33 = vld [vmem:[%s4661_s9 + $0xc] sm:$0xf]  ;;  %v561_v34 = vld [vmem:[%s4661_s9 + $0x18] sm:$0xf] }
  0x62   : > { %558 = vst [vmem:[%s533_s16] sm:$0xf] %v557_v32  ;;  %560 = vst [vmem:[%s533_s16 + $0x4] sm:$0xf] %v559_v33  ;;  %v563_v35 = vld [vmem:[%s4661_s9 + $0x24] sm:$0xf] }
  0x63   : > { %562 = vst [vmem:[%s533_s16 + $0x8] sm:$0xf] %v561_v34  ;;  %v565_v36 = vld [vmem:[%s4661_s9 + $0x30] sm:$0xf]  ;;  %v567_v37 = vld [vmem:[%s4661_s9 + $0x3c] sm:$0xf] }
  0x64   : > { %564 = vst [vmem:[%s533_s16 + $0xc] sm:$0xf] %v563_v35  ;;  %566 = vst [vmem:[%s533_s16 + $0x10] sm:$0xf] %v565_v36  ;;  %v569_v38 = vld [vmem:[%s4661_s9 + $0x48] sm:$0xf] }
  0x65   : > { %568 = vst [vmem:[%s533_s16 + $0x14] sm:$0xf] %v567_v37  ;;  %v571_v39 = vld [vmem:[%s4661_s9 + $0x54] sm:$0xf]  ;;  %v573_v40 = vld [vmem:[%s4661_s9 + $0x60] sm:$0xf] }
  0x66   : > { %570 = vst [vmem:[%s533_s16 + $0x18] sm:$0xf] %v569_v38  ;;  %572 = vst [vmem:[%s533_s16 + $0x1c] sm:$0xf] %v571_v39  ;;  %v575_v41 = vld [vmem:[%s4661_s9 + $0x6c] sm:$0xf] }
  0x67   : > { %574 = vst [vmem:[%s533_s16 + $0x20] sm:$0xf] %v573_v40  ;;  %v577_v42 = vld [vmem:[%s4661_s9 + $0x78] sm:$0xf]  ;;  %v579_v43 = vld [vmem:[%s4661_s9 + $0x84] sm:$0xf] }
  0x68   : > { %576 = vst [vmem:[%s533_s16 + $0x24] sm:$0xf] %v575_v41  ;;  %578 = vst [vmem:[%s533_s16 + $0x28] sm:$0xf] %v577_v42  ;;  %v581_v44 = vld [vmem:[%s4661_s9 + $0x90] sm:$0xf] }
  0x69   : > { %580 = vst [vmem:[%s533_s16 + $0x2c] sm:$0xf] %v579_v43  ;;  %v583_v45 = vld [vmem:[%s4661_s9 + $0x9c] sm:$0xf]  ;;  %v585_v46 = vld [vmem:[%s4661_s9 + $0xa8] sm:$0xf] }
  0x6a   : > { %582 = vst [vmem:[%s533_s16 + $0x30] sm:$0xf] %v581_v44  ;;  %584 = vst [vmem:[%s533_s16 + $0x34] sm:$0xf] %v583_v45  ;;  %v587_v47 = vld [vmem:[%s4661_s9 + $0xb4] sm:$0xf] }
  0x6b   : > { %586 = vst [vmem:[%s533_s16 + $0x38] sm:$0xf] %v585_v46  ;;  %588 = vst [vmem:[%s533_s16 + $0x3c] sm:$0xf] %v587_v47 }
  0x6c PF: > { %643 = sbr.rel (!%p4570_p8) target bundleno = 128 (0x80), region = 115  ;;  %s645_s6 = sand.u32 (%p4570_p8), 1, %s4332_s10  }
  0x6d   : > { %s4142_s23 = smul.u32 (%p4570_p8), 48, %s4556_s11  ;;  %s3239_s29 = sshll.u32 (%p4570_p8), %s645_s6, 6 }
  0x6e   : > { %s5316_s2 = sld [smem:[#allocation18_spill]] (%p4570_p8)  ;;  %s647_s11 = scalar_lea.vmem (%p4570_p8), [#allocation8], %s3239_s29 }
  0x6f   : > { %s653_s13 = sadd.s32 (%p4570_p8), %s4142_s23, %s4559_s5 }
  0x70   : > { %s3242_s24 = sshll.u32 (%p4570_p8), %s653_s13, 2 }
  0x74   : > { %s4687_s25 = scalar_lea.vmem %s5316_s2, %s3242_s24 }
  0x75   : > { %v671_v48 = vld [vmem:[%s4687_s25] sm:$0xf]  ;;  %v673_v49 = vld [vmem:[%s4687_s25 + $0xc] sm:$0xf]  ;;  %v675_v50 = vld [vmem:[%s4687_s25 + $0x18] sm:$0xf] }
  0x76   : > { %672 = vst [vmem:[%s647_s11] sm:$0xf] %v671_v48  ;;  %674 = vst [vmem:[%s647_s11 + $0x4] sm:$0xf] %v673_v49  ;;  %v677_v51 = vld [vmem:[%s4687_s25 + $0x24] sm:$0xf] }
  0x77   : > { %676 = vst [vmem:[%s647_s11 + $0x8] sm:$0xf] %v675_v50  ;;  %v679_v52 = vld [vmem:[%s4687_s25 + $0x30] sm:$0xf]  ;;  %v681_v53 = vld [vmem:[%s4687_s25 + $0x3c] sm:$0xf] }
  0x78   : > { %678 = vst [vmem:[%s647_s11 + $0xc] sm:$0xf] %v677_v51  ;;  %680 = vst [vmem:[%s647_s11 + $0x10] sm:$0xf] %v679_v52  ;;  %v683_v54 = vld [vmem:[%s4687_s25 + $0x48] sm:$0xf] }
  0x79   : > { %682 = vst [vmem:[%s647_s11 + $0x14] sm:$0xf] %v681_v53  ;;  %v685_v55 = vld [vmem:[%s4687_s25 + $0x54] sm:$0xf]  ;;  %v687_v56 = vld [vmem:[%s4687_s25 + $0x60] sm:$0xf] }
  0x7a   : > { %684 = vst [vmem:[%s647_s11 + $0x18] sm:$0xf] %v683_v54  ;;  %686 = vst [vmem:[%s647_s11 + $0x1c] sm:$0xf] %v685_v55  ;;  %v689_v57 = vld [vmem:[%s4687_s25 + $0x6c] sm:$0xf] }
  0x7b   : > { %688 = vst [vmem:[%s647_s11 + $0x20] sm:$0xf] %v687_v56  ;;  %v691_v58 = vld [vmem:[%s4687_s25 + $0x78] sm:$0xf]  ;;  %v693_v59 = vld [vmem:[%s4687_s25 + $0x84] sm:$0xf] }
  0x7c   : > { %690 = vst [vmem:[%s647_s11 + $0x24] sm:$0xf] %v689_v57  ;;  %692 = vst [vmem:[%s647_s11 + $0x28] sm:$0xf] %v691_v58  ;;  %v695_v60 = vld [vmem:[%s4687_s25 + $0x90] sm:$0xf] }
  0x7d   : > { %694 = vst [vmem:[%s647_s11 + $0x2c] sm:$0xf] %v693_v59  ;;  %v697_v61 = vld [vmem:[%s4687_s25 + $0x9c] sm:$0xf]  ;;  %v699_v62 = vld [vmem:[%s4687_s25 + $0xa8] sm:$0xf] }
  0x7e   : > { %696 = vst [vmem:[%s647_s11 + $0x30] sm:$0xf] %v695_v60  ;;  %698 = vst [vmem:[%s647_s11 + $0x34] sm:$0xf] %v697_v61  ;;  %v701_v63 = vld [vmem:[%s4687_s25 + $0xb4] sm:$0xf] }
  0x7f   : > { %700 = vst [vmem:[%s647_s11 + $0x38] sm:$0xf] %v699_v62  ;;  %702 = vst [vmem:[%s647_s11 + $0x3c] sm:$0xf] %v701_v63 }
  0x80 PF: > { %p3243_p7 = scmp.ge.s32.totalorder %s4376_s21, 1  ;;  %p756_p10 = scmp.lt.s32.totalorder %s4376_s21, 28 }
  0x82   : > { %p757_p12 = pnand %p3243_p7, %p756_p10 }
  0x83   : > { %s5317_s5 = sld [smem:[#allocation10_spill]] (!%p757_p12)  ;;  %s5318_s15 = sld [smem:[#allocation9_spill]] (!%p757_p12) }
  0x84   : > { %760 = sbr.rel (%p757_p12) target bundleno = 1886 (0x75e), region = 156  ;;  %s5319_s3 = sld [smem:[#allocation13_spill]] (!%p757_p12) }
  0x85   : > { %s5320_s7 = sld [smem:[#allocation12_spill]] (!%p757_p12)  ;;  %s777_s23 = sand.u32 (!%p757_p12), 1, %s4328_s30  }
  0x86   : > { %s5321_s29 = sld [smem:[#allocation11_spill]] (!%p757_p12)  ;;  %s4715_s13 = sshll.u32 (!%p757_p12), %s777_s23, 6 }
  0x87   : > { %s4757_s1 = scalar_lea.vmem (!%p757_p12), [#allocation8], %s4715_s13 }
  0x89   : > { %s763_s8 = sand.u32 (!%p757_p12), 1, %s5317_s5   ;;  %s770_s9 = sand.u32 (!%p757_p12), 1, %s5318_s15  }
  0x8a   : > { %s4709_s16 = sshll.u32 (!%p757_p12), %s763_s8, 8  ;;  %s4711_s6 = sshll.u32 (!%p757_p12), %s770_s9, 6 }
  0x8b   : > { %p857_p13 = scmp.lt.s32.totalorder %s5319_s3, 0  ;;  %p858_p0 = scmp.gt.s32.totalorder %s5319_s3, 0 }
  0x8c   : > { %p872_p1 = scmp.lt.s32.totalorder %s5319_s3, 1  ;;  %p873_p2 = scmp.gt.s32.totalorder %s5319_s3, 1 }
  0x8d   : > { %s859_s24 = scalar_select %p858_p0, 2, %s5320_s7 }
  0x8e   : > { %p886_p3 = scmp.lt.s32.totalorder %s5319_s3, 2  ;;  %p887_p4 = scmp.gt.s32.totalorder %s5319_s3, 2 }
  0x8f   : > { %s5370_s24 = smov (%p857_p13, %s859_s24), 0  ;;  %s4726_s11 = sshll.u32 %s5321_s29, 7 }
  0x90   : > { %s874_s26 = scalar_select %p873_p2, 2, %s5320_s7 }
  0x91   : > { %s3247_s27 = sshll.u32 %s5370_s24, 4  ;;  %s5322_s9 = sld [smem:[#allocation23_spill]] }
  0x92   : > { %p862_p5 = scmp.lt.s32.totalorder %s3247_s27, 47  ;;  %s5372_s26 = smov (%p872_p1, %s874_s26), 0 }
  0x93   : > { %s3250_s25 = sshll.u32 %s5372_s26, 4  ;;  %p903_p8 = scmp.eq.s32.totalorder %s5319_s3, 0 }
  0x94   : > { %s5374_s27 = smov (!%p862_p5, %s3247_s27), 47  ;;  %p877_p6 = scmp.lt.s32.totalorder %s3250_s25, 47 }
  0x95   : > { %s3346_s5 = sshll.u32 %s5374_s27, 3  ;;  %p904_p9 = scmp.eq.s32.totalorder %s5320_s7, 0 }
  0x96   : > { %s5376_s25 = smov (!%p877_p6, %s3250_s25), 47  ;;  %s5323_s26 = sld [smem:[#allocation24_spill]] }
  0x97   : > { %s4731_s23 = scalar_lea.vmem %s5322_s9, %s3346_s5  ;;  %s3251_s0 = sshll.u32 %s5376_s25, 2 }
  0x98   : > { %s888_s24 = scalar_select %p887_p4, 2, %s5320_s7 }
  0x99   : > { %p905_p11 = pnand %p904_p9, %p903_p8  ;;  %s5324_s9 = sld [smem:[#allocation25_spill]] }
  0x9a   : > { %s5378_s24 = smov (%p886_p3, %s888_s24), 0  ;;  %s4751_s25 = scalar_lea.vmem [#allocation6], %s4709_s16 }
  0x9b   : > { %s3252_s27 = sshll.u32 %s5378_s24, 4  ;;  %s4754_s7 = scalar_lea.vmem [#allocation7], %s4711_s6  ;;  %v909_v9 = vld [vmem:[%s4751_s25] sm:$0xff] (!%p905_p11)  ;;  %v910_v26 = vld [vmem:[%s4751_s25 + $0x8] sm:$0xff] (!%p905_p11)  ;;  %v911_v28 = vld [vmem:[%s4751_s25 + $0x10] sm:$0xff] (!%p905_p11) }
  0x9c   : > { %s4739_s29 = scalar_lea.vmem %s5323_s26, %s3251_s0  ;;  %p891_p7 = scmp.lt.s32.totalorder %s3252_s27, 47  ;;  %v925_v10 = vld [vmem:[%s4751_s25 + $0x80] sm:$0xff] (!%p905_p11)  ;;  %3685 = vmatprep.mubr.f32.mxu0 (!%p905_p11), %v909_v9  ;;  %v926_v27 = vld [vmem:[%s4751_s25 + $0x88] sm:$0xff] (!%p905_p11)  ;;  %v927_v29 = vld [vmem:[%s4751_s25 + $0x90] sm:$0xff] (!%p905_p11) }
  0x9d   : > { %908 = sbr.rel (%p905_p11) target bundleno = 442 (0x1ba), region = 172  ;;  %s5325_s3 = sld [smem:[#allocation19_spill]] (!%p905_p11)  ;;  %3709 = vmatprep.mubr.f32.mxu1 (!%p905_p11), %v925_v10  ;;  %v912_v30 = vld [vmem:[%s4751_s25 + $0x18] sm:$0xff] (!%p905_p11)  ;;  %v913_v32 = vld [vmem:[%s4751_s25 + $0x20] sm:$0xff] (!%p905_p11)  ;;  %v914_v34 = vld [vmem:[%s4751_s25 + $0x28] sm:$0xff] (!%p905_p11) }
  0x9e   : > { %s5380_s27 = smov (!%p891_p7, %s3252_s27), 47  ;;  %v928_v31 = vld [vmem:[%s4751_s25 + $0x98] sm:$0xff] (!%p905_p11)  ;;  %v929_v33 = vld [vmem:[%s4751_s25 + $0xa0] sm:$0xff] (!%p905_p11)  ;;  %v930_v35 = vld [vmem:[%s4751_s25 + $0xa8] sm:$0xff] (!%p905_p11)  ;;  %s4840_s13 = scalar_lea.vmem (!%p905_p11), [#allocation2], %s4726_s11 }
  0x9f   : > { %s3253_s5 = sshll.u32 %s5380_s27, 2  ;;  %v915_v36 = vld [vmem:[%s4751_s25 + $0x30] sm:$0xff] (!%p905_p11)  ;;  %v916_v38 = vld [vmem:[%s4751_s25 + $0x38] sm:$0xff] (!%p905_p11)  ;;  %v917_v40 = vld [vmem:[%s4751_s25 + $0x40] sm:$0xff] (!%p905_p11) }
  0xa0   : > { %s4748_s2 = scalar_lea.vmem %s5324_s9, %s3253_s5  ;;  %v931_v37 = vld [vmem:[%s4751_s25 + $0xb0] sm:$0xff] (!%p905_p11)  ;;  %v932_v39 = vld [vmem:[%s4751_s25 + $0xb8] sm:$0xff] (!%p905_p11)  ;;  %v933_v41 = vld [vmem:[%s4751_s25 + $0xc0] sm:$0xff] (!%p905_p11) }
  0xa1   : > { %v918_v42 = vld [vmem:[%s4751_s25 + $0x48] sm:$0xff] (!%p905_p11)  ;;  %v919_v44 = vld [vmem:[%s4751_s25 + $0x50] sm:$0xff] (!%p905_p11)  ;;  %v920_v46 = vld [vmem:[%s4751_s25 + $0x58] sm:$0xff] (!%p905_p11) }
  0xa2   : > { %v934_v43 = vld [vmem:[%s4751_s25 + $0xc8] sm:$0xff] (!%p905_p11)  ;;  %v935_v45 = vld [vmem:[%s4751_s25 + $0xd0] sm:$0xff] (!%p905_p11)  ;;  %v936_v47 = vld [vmem:[%s4751_s25 + $0xd8] sm:$0xff] (!%p905_p11) }
  0xa3   : > { %v941_v0 = vld [vmem:[%s5325_s3] sm:$0xff] (!%p905_p11)  ;;  %v942_v1 = vld [vmem:[%s5325_s3 + $0x8] sm:$0xff] (!%p905_p11)  ;;  %v943_v2 = vld [vmem:[%s5325_s3 + $0x10] sm:$0xff] (!%p905_p11) }
  0xa4   : > { %v3933_v3 = vpack.c.bf16 %v942_v1, %v941_v0  ;;  %v944_v4 = vld [vmem:[%s5325_s3 + $0x18] sm:$0xff]  ;;  %v945_v6 = vld [vmem:[%s5325_s3 + $0x20] sm:$0xff]  ;;  %v946_v7 = vld [vmem:[%s5325_s3 + $0x28] sm:$0xff] }
  0xa5   : > { %v3937_v5 = vpack.c.bf16 %v944_v4, %v943_v2  ;;  %v3941_v8 = vpack.c.bf16 %v946_v7, %v945_v6  ;;  %v947_v11 = vld [vmem:[%s5325_s3 + $0x30] sm:$0xff]  ;;  %v948_v12 = vld [vmem:[%s5325_s3 + $0x38] sm:$0xff]  ;;  %v949_v14 = vld [vmem:[%s5325_s3 + $0x40] sm:$0xff] }
  0xa6   : > { %3934 = vmatprep.subr.bf16.mxu0 %v3933_v3  ;;  %4061 = vmatprep.subr.bf16.mxu1 %v3933_v3  ;;  %v3945_v13 = vpack.c.bf16 %v948_v12, %v947_v11  ;;  %v950_v15 = vld [vmem:[%s5325_s3 + $0x48] sm:$0xff]  ;;  %v951_v17 = vld [vmem:[%s5325_s3 + $0x50] sm:$0xff]  ;;  %v952_v18 = vld [vmem:[%s5325_s3 + $0x58] sm:$0xff] }
  0xa7   : > { %3936 = vmatpush3.bf16.msra.mxu0 %v3933_v3  ;;  %4069 = vmatpush3.bf16.msra.mxu1 %v3933_v3  ;;  %v3949_v16 = vpack.c.bf16 %v950_v15, %v949_v14  ;;  %v3953_v19 = vpack.c.bf16 %v952_v18, %v951_v17  ;;  %v953_v20 = vld [vmem:[%s5325_s3 + $0x60] sm:$0xff]  ;;  %v954_v21 = vld [vmem:[%s5325_s3 + $0x68] sm:$0xff]  ;;  %v955_v23 = vld [vmem:[%s5325_s3 + $0x70] sm:$0xff] }
  0xa8   : > { %3938 = vmatprep.subr.bf16.mxu0 %v3937_v5  ;;  %4062 = vmatprep.subr.bf16.mxu1 %v3937_v5  ;;  %v3957_v22 = vpack.c.bf16 %v954_v21, %v953_v20  ;;  %v956_v24 = vld [vmem:[%s5325_s3 + $0x78] sm:$0xff]  ;;  %v921_v48 = vld [vmem:[%s4751_s25 + $0x60] sm:$0xff]  ;;  %v922_v50 = vld [vmem:[%s4751_s25 + $0x68] sm:$0xff] }
  0xa9   : > { %v3961_v25 = vpack.c.bf16 %v956_v24, %v955_v23  ;;  %v937_v49 = vld [vmem:[%s4751_s25 + $0xe0] sm:$0xff]  ;;  %v938_v51 = vld [vmem:[%s4751_s25 + $0xe8] sm:$0xff]  ;;  %v923_v52 = vld [vmem:[%s4751_s25 + $0x70] sm:$0xff] }
  0xaa   : > { %v939_v53 = vld [vmem:[%s4751_s25 + $0xf0] sm:$0xff]  ;;  %v924_v54 = vld [vmem:[%s4751_s25 + $0x78] sm:$0xff] }
  0xab   : > { %3940 = vmatpush3.bf16.msra.mxu0 %v3937_v5  ;;  %4070 = vmatpush3.bf16.msra.mxu1 %v3937_v5  ;;  %v940_v55 = vld [vmem:[%s4751_s25 + $0xf8] sm:$0xff] }
  0xac   : > { %3942 = vmatprep.subr.bf16.mxu0 %v3941_v8  ;;  %4063 = vmatprep.subr.bf16.mxu1 %v3941_v8 }
  0xaf   : > { %3944 = vmatpush3.bf16.msra.mxu0 %v3941_v8  ;;  %4071 = vmatpush3.bf16.msra.mxu1 %v3941_v8 }
  0xb0   : > { %3946 = vmatprep.subr.bf16.mxu0 %v3945_v13  ;;  %4064 = vmatprep.subr.bf16.mxu1 %v3945_v13 }
  0xb3   : > { %3948 = vmatpush3.bf16.msra.mxu0 %v3945_v13  ;;  %4072 = vmatpush3.bf16.msra.mxu1 %v3945_v13 }
  0xb4   : > { %3950 = vmatprep.subr.bf16.mxu0 %v3949_v16  ;;  %4065 = vmatprep.subr.bf16.mxu1 %v3949_v16 }
  0xb7   : > { %3952 = vmatpush3.bf16.msra.mxu0 %v3949_v16  ;;  %4073 = vmatpush3.bf16.msra.mxu1 %v3949_v16 }
  0xb8   : > { %3954 = vmatprep.subr.bf16.mxu0 %v3953_v19  ;;  %4066 = vmatprep.subr.bf16.mxu1 %v3953_v19 }
  0xbb   : > { %3956 = vmatpush3.bf16.msra.mxu0 %v3953_v19  ;;  %4074 = vmatpush3.bf16.msra.mxu1 %v3953_v19 }
  0xbc   : > { %3958 = vmatprep.subr.bf16.mxu0 %v3957_v22  ;;  %4067 = vmatprep.subr.bf16.mxu1 %v3957_v22 }
  0xbf   : > { %3960 = vmatpush3.bf16.msra.mxu0 %v3957_v22  ;;  %4075 = vmatpush3.bf16.msra.mxu1 %v3957_v22 }
  0xc0   : > { %3962 = vmatprep.subr.bf16.mxu0 %v3961_v25  ;;  %4068 = vmatprep.subr.bf16.mxu1 %v3961_v25 }
  0xc3   : > { %3964 = vmatpush3.bf16.msra.mxu0 %v3961_v25  ;;  %4076 = vmatpush3.bf16.msra.mxu1 %v3961_v25 }
  0xc6   : > { %3686 = vmatmul.mubr.f32.vlgmr.msra.gmra.mrb[0].mxu0 %v910_v26  ;;  %3710 = vmatmul.mubr.f32.vlgmr.msra.gmra.mrb[0].mxu1 %v926_v27 }
  0xc7   : > { %3688 = vmatprep.mubr.f32.mxu0 %v911_v28  ;;  %3712 = vmatprep.mubr.f32.mxu1 %v927_v29 }
  0xca   : > { %3689 = vmatmul.mubr.f32.gmra.mrb[2].mxu0 %v912_v30  ;;  %3713 = vmatmul.mubr.f32.gmra.mrb[2].mxu1 %v928_v31 }
  0xcb   : > { %3691 = vmatprep.mubr.f32.mxu0 %v913_v32  ;;  %3715 = vmatprep.mubr.f32.mxu1 %v929_v33 }
  0xce   : > { %3692 = vmatmul.mubr.f32.gmra.mrb[4].mxu0 %v914_v34  ;;  %3716 = vmatmul.mubr.f32.gmra.mrb[4].mxu1 %v930_v35 }
  0xcf   : > { %3694 = vmatprep.mubr.f32.mxu0 %v915_v36  ;;  %3718 = vmatprep.mubr.f32.mxu1 %v931_v37 }
  0xd2   : > { %3695 = vmatmul.mubr.f32.gmra.mrb[6].mxu0 %v916_v38  ;;  %3719 = vmatmul.mubr.f32.gmra.mrb[6].mxu1 %v932_v39 }
  0xd3   : > { %3697 = vmatprep.mubr.f32.mxu0 %v917_v40  ;;  %3721 = vmatprep.mubr.f32.mxu1 %v933_v41 }
  0xd6   : > { %3698 = vmatmul.mubr.f32.gmra.mrb[8].mxu0 %v918_v42  ;;  %3722 = vmatmul.mubr.f32.gmra.mrb[8].mxu1 %v934_v43 }
  0xd7   : > { %3700 = vmatprep.mubr.f32.mxu0 %v919_v44  ;;  %3724 = vmatprep.mubr.f32.mxu1 %v935_v45 }
  0xda   : > { %3701 = vmatmul.mubr.f32.gmra.mrb[10].mxu0 %v920_v46  ;;  %3725 = vmatmul.mubr.f32.gmra.mrb[10].mxu1 %v936_v47 }
  0xdb   : > { %3703 = vmatprep.mubr.f32.mxu0 %v921_v48  ;;  %3727 = vmatprep.mubr.f32.mxu1 %v937_v49 }
  0xde   : > { %3704 = vmatmul.mubr.f32.gmra.mrb[12].mxu0 %v922_v50  ;;  %3728 = vmatmul.mubr.f32.gmra.mrb[12].mxu1 %v938_v51 }
  0xdf   : > { %3706 = vmatprep.mubr.f32.mxu0 %v923_v52  ;;  %3730 = vmatprep.mubr.f32.mxu1 %v939_v53 }
  0xe2   : > { %3707 = vmatmul.mubr.f32.gmra.mrb[14].mxu0 %v924_v54  ;;  %3731 = vmatmul.mubr.f32.gmra.mrb[14].mxu1 %v940_v55 }
 0x199   : > { %v3687_v56 = vpop.f32.mrb[0].mxu0  ;;  %v3711_v57 = vpop.f32.mrb[0].mxu1 }
 0x19a   : > { %v1023_v58 = vpop.f32.mrb[1].mxu0  ;;  %v1103_v59 = vpop.f32.mrb[1].mxu1 }
 0x19b   : > { %v1182_v60 = vpack.c.bf16 %v3687_v56, %v1023_v58  ;;  %v1203_v61 = vpack.c.bf16 %v3711_v57, %v1103_v59 }
 0x19d   : > { %1195 = vst [vmem:[%s4840_s13] sm:$0xff] %v1182_v60  ;;  %1211 = vst [vmem:[%s4840_s13 + $0x8] sm:$0xff] %v1203_v61  ;;  %v3690_v62 = vpop.f32.mrb[2].mxu0  ;;  %v3714_v63 = vpop.f32.mrb[2].mxu1 }
 0x19e   : > { %v1033_v0 = vpop.f32.mrb[3].mxu0  ;;  %v1113_v1 = vpop.f32.mrb[3].mxu1 }
 0x19f   : > { %v1183_v2 = vpack.c.bf16 %v3690_v62, %v1033_v0  ;;  %v1204_v3 = vpack.c.bf16 %v3714_v63, %v1113_v1 }
 0x1a1   : > { %1196 = vst [vmem:[%s4840_s13 + $0x10] sm:$0xff] %v1183_v2  ;;  %1212 = vst [vmem:[%s4840_s13 + $0x18] sm:$0xff] %v1204_v3  ;;  %v3693_v4 = vpop.f32.mrb[4].mxu0  ;;  %v3717_v5 = vpop.f32.mrb[4].mxu1 }
 0x1a2   : > { %v1043_v6 = vpop.f32.mrb[5].mxu0  ;;  %v1123_v7 = vpop.f32.mrb[5].mxu1 }
 0x1a3   : > { %v1184_v8 = vpack.c.bf16 %v3693_v4, %v1043_v6  ;;  %v1205_v9 = vpack.c.bf16 %v3717_v5, %v1123_v7 }
 0x1a5   : > { %1197 = vst [vmem:[%s4840_s13 + $0x20] sm:$0xff] %v1184_v8  ;;  %1213 = vst [vmem:[%s4840_s13 + $0x28] sm:$0xff] %v1205_v9  ;;  %v3696_v10 = vpop.f32.mrb[6].mxu0  ;;  %v3720_v11 = vpop.f32.mrb[6].mxu1 }
 0x1a6   : > { %v1053_v12 = vpop.f32.mrb[7].mxu0  ;;  %v1133_v13 = vpop.f32.mrb[7].mxu1 }
 0x1a7   : > { %v1185_v14 = vpack.c.bf16 %v3696_v10, %v1053_v12  ;;  %v1206_v15 = vpack.c.bf16 %v3720_v11, %v1133_v13 }
 0x1a9   : > { %1198 = vst [vmem:[%s4840_s13 + $0x30] sm:$0xff] %v1185_v14  ;;  %1214 = vst [vmem:[%s4840_s13 + $0x38] sm:$0xff] %v1206_v15  ;;  %v3699_v16 = vpop.f32.mrb[8].mxu0  ;;  %v3723_v17 = vpop.f32.mrb[8].mxu1 }
 0x1aa   : > { %v1063_v18 = vpop.f32.mrb[9].mxu0  ;;  %v1143_v19 = vpop.f32.mrb[9].mxu1 }
 0x1ab   : > { %v1186_v20 = vpack.c.bf16 %v3699_v16, %v1063_v18  ;;  %v1207_v21 = vpack.c.bf16 %v3723_v17, %v1143_v19 }
 0x1ad   : > { %1199 = vst [vmem:[%s4840_s13 + $0x40] sm:$0xff] %v1186_v20  ;;  %1215 = vst [vmem:[%s4840_s13 + $0x48] sm:$0xff] %v1207_v21  ;;  %v3702_v22 = vpop.f32.mrb[10].mxu0  ;;  %v3726_v23 = vpop.f32.mrb[10].mxu1 }
 0x1ae   : > { %v1073_v24 = vpop.f32.mrb[11].mxu0  ;;  %v1153_v25 = vpop.f32.mrb[11].mxu1 }
 0x1af   : > { %v1187_v26 = vpack.c.bf16 %v3702_v22, %v1073_v24  ;;  %v1208_v27 = vpack.c.bf16 %v3726_v23, %v1153_v25 }
 0x1b1   : > { %1200 = vst [vmem:[%s4840_s13 + $0x50] sm:$0xff] %v1187_v26  ;;  %1216 = vst [vmem:[%s4840_s13 + $0x58] sm:$0xff] %v1208_v27  ;;  %v3705_v28 = vpop.f32.mrb[12].mxu0  ;;  %v3729_v29 = vpop.f32.mrb[12].mxu1 }
 0x1b2   : > { %v1083_v30 = vpop.f32.mrb[13].mxu0  ;;  %v1163_v31 = vpop.f32.mrb[13].mxu1 }
 0x1b3   : > { %v1188_v32 = vpack.c.bf16 %v3705_v28, %v1083_v30  ;;  %v1209_v33 = vpack.c.bf16 %v3729_v29, %v1163_v31 }
 0x1b5   : > { %1201 = vst [vmem:[%s4840_s13 + $0x60] sm:$0xff] %v1188_v32  ;;  %1217 = vst [vmem:[%s4840_s13 + $0x68] sm:$0xff] %v1209_v33  ;;  %v3708_v34 = vpop.f32.mrb[14].mxu0  ;;  %v3732_v35 = vpop.f32.mrb[14].mxu1 }
 0x1b6   : > { %v1093_v36 = vpop.f32.mrb[15].mxu0  ;;  %v1173_v37 = vpop.f32.mrb[15].mxu1 }
 0x1b7   : > { %v1189_v38 = vpack.c.bf16 %v3708_v34, %v1093_v36  ;;  %v1210_v39 = vpack.c.bf16 %v3732_v35, %v1173_v37 }
 0x1b9   : > { %1202 = vst [vmem:[%s4840_s13 + $0x70] sm:$0xff] %v1189_v38  ;;  %1218 = vst [vmem:[%s4840_s13 + $0x78] sm:$0xff] %v1210_v39 }
 0x1ba PF: > { %s5326_s25 = sld [smem:[#allocation11_spill]] }
 0x1c0   : > { %p3258_p10 = scmp.ne.s32.totalorder %s5326_s25, 0 }
 0x1c1   : > { %v4378_v40 = vmov (!%p3258_p10), 0.0  }
 0x1c2   : > { %1222 = sbr.rel (%p3258_p10) target bundleno = 466 (0x1d2), region = 176  ;;  %1223 = vst [vmem:[#allocation5] sm:$0xff] (!%p3258_p10), %v4378_v40  ;;  %1224 = vst [vmem:[#allocation5 + $0x8] sm:$0xff] (!%p3258_p10), %v4378_v40 }
 0x1c3   : > { %1225 = vst [vmem:[#allocation5 + $0x10] sm:$0xff] (!%p3258_p10), %v4378_v40  ;;  %1226 = vst [vmem:[#allocation5 + $0x18] sm:$0xff] (!%p3258_p10), %v4378_v40 }
 0x1c4   : > { %1227 = vst [vmem:[#allocation5 + $0x20] sm:$0xff] (!%p3258_p10), %v4378_v40  ;;  %1228 = vst [vmem:[#allocation5 + $0x28] sm:$0xff] (!%p3258_p10), %v4378_v40 }
 0x1c5   : > { %1229 = vst [vmem:[#allocation5 + $0x30] sm:$0xff] (!%p3258_p10), %v4378_v40  ;;  %1230 = vst [vmem:[#allocation5 + $0x38] sm:$0xff] (!%p3258_p10), %v4378_v40 }
 0x1c6   : > { %1231 = vst [vmem:[#allocation5 + $0x40] sm:$0xff] (!%p3258_p10), %v4378_v40  ;;  %1232 = vst [vmem:[#allocation5 + $0x48] sm:$0xff] (!%p3258_p10), %v4378_v40 }
 0x1c7   : > { %1233 = vst [vmem:[#allocation5 + $0x50] sm:$0xff] (!%p3258_p10), %v4378_v40  ;;  %1234 = vst [vmem:[#allocation5 + $0x58] sm:$0xff] (!%p3258_p10), %v4378_v40 }
 0x1c8   : > { %1235 = vst [vmem:[#allocation5 + $0x60] sm:$0xff] (!%p3258_p10), %v4378_v40  ;;  %1236 = vst [vmem:[#allocation5 + $0x68] sm:$0xff] (!%p3258_p10), %v4378_v40 }
 0x1c9   : > { %1237 = vst [vmem:[#allocation5 + $0x70] sm:$0xff] %v4378_v40  ;;  %1238 = vst [vmem:[#allocation5 + $0x78] sm:$0xff] %v4378_v40 }
 0x1ca   : > { %1239 = vst [vmem:[#allocation5 + $0x80] sm:$0xff] %v4378_v40  ;;  %1240 = vst [vmem:[#allocation5 + $0x88] sm:$0xff] %v4378_v40 }
 0x1cb   : > { %1241 = vst [vmem:[#allocation5 + $0x90] sm:$0xff] %v4378_v40  ;;  %1242 = vst [vmem:[#allocation5 + $0x98] sm:$0xff] %v4378_v40 }
 0x1cc   : > { %1243 = vst [vmem:[#allocation5 + $0xa0] sm:$0xff] %v4378_v40  ;;  %1244 = vst [vmem:[#allocation5 + $0xa8] sm:$0xff] %v4378_v40 }
 0x1cd   : > { %1245 = vst [vmem:[#allocation5 + $0xb0] sm:$0xff] %v4378_v40  ;;  %1246 = vst [vmem:[#allocation5 + $0xb8] sm:$0xff] %v4378_v40 }
 0x1ce   : > { %1247 = vst [vmem:[#allocation5 + $0xc0] sm:$0xff] %v4378_v40  ;;  %1248 = vst [vmem:[#allocation5 + $0xc8] sm:$0xff] %v4378_v40 }
 0x1cf   : > { %1249 = vst [vmem:[#allocation5 + $0xd0] sm:$0xff] %v4378_v40  ;;  %1250 = vst [vmem:[#allocation5 + $0xd8] sm:$0xff] %v4378_v40 }
 0x1d0   : > { %1251 = vst [vmem:[#allocation5 + $0xe0] sm:$0xff] %v4378_v40  ;;  %1252 = vst [vmem:[#allocation5 + $0xe8] sm:$0xff] %v4378_v40 }
 0x1d1   : > { %1253 = vst [vmem:[#allocation5 + $0xf0] sm:$0xff] %v4378_v40  ;;  %1254 = vst [vmem:[#allocation5 + $0xf8] sm:$0xff] %v4378_v40 }
 0x1d2 PF: > { %s5327_s15 = sld [smem:[#allocation13_spill]] }
 0x1d8   : > { %p3259_p12 = scmp.ne.s32.totalorder %s5327_s15, 0 }
 0x1d9   : > { %s4861_s8 = scalar_lea.vmem (!%p3259_p12), [#allocation2], %s4726_s11  ;;  %v4379_v44 = vmov (!%p3259_p12), 0   ;;  %v4250_v58 = vld [vmem:[%s4754_s7] sm:$0xff] (!%p3259_p12)   ;;  %v4252_v60 = vld [vmem:[%s4754_s7 + $0x8] sm:$0xff] (!%p3259_p12)   ;;  %v4254_v62 = vld [vmem:[%s4754_s7 + $0x10] sm:$0xff] (!%p3259_p12)  }
 0x1da   : > { %1257 = sbr.rel (%p3259_p12) target bundleno = 749 (0x2ed), region = 180  ;;  %v1312_v41 = vld [vmem:[%s4861_s8 + $0x8] sm:$0xff] (!%p3259_p12)  ;;  %v1311_v42 = vld [vmem:[%s4861_s8] sm:$0xff] (!%p3259_p12)  ;;  %v1314_v43 = vld [vmem:[%s4861_s8 + $0x18] sm:$0xff] (!%p3259_p12)  ;;  %1407 = vmatprep.mubr.bf16.mxu0 (!%p3259_p12), %v4379_v44  ;;  %1447 = vmatprep.mubr.bf16.mxu1 (!%p3259_p12), %v4379_v44 }
 0x1db   : > { %1375 = vmatprep.subr.bf16.mxu0 (!%p3259_p12), %v1312_v41  ;;  %4077 = vmatprep.subr.bf16.mxu1 (!%p3259_p12), %v1312_v41  ;;  %v1313_v45 = vld [vmem:[%s4861_s8 + $0x10] sm:$0xff] (!%p3259_p12)  ;;  %v1316_v46 = vld [vmem:[%s4861_s8 + $0x28] sm:$0xff] (!%p3259_p12)  ;;  %v1315_v47 = vld [vmem:[%s4861_s8 + $0x20] sm:$0xff] (!%p3259_p12) }
 0x1dc   : > { %1376 = vmatpush1.bf16.msra.mxu0 (!%p3259_p12), %v1311_v42  ;;  %4085 = vmatpush1.bf16.msra.mxu1 (!%p3259_p12), %v1311_v42  ;;  %v1318_v48 = vld [vmem:[%s4861_s8 + $0x38] sm:$0xff] (!%p3259_p12)  ;;  %v1317_v49 = vld [vmem:[%s4861_s8 + $0x30] sm:$0xff] (!%p3259_p12)  ;;  %v1320_v50 = vld [vmem:[%s4861_s8 + $0x48] sm:$0xff] (!%p3259_p12) }
 0x1dd   : > { %1377 = vmatprep.subr.bf16.mxu0 (!%p3259_p12), %v1314_v43  ;;  %4078 = vmatprep.subr.bf16.mxu1 (!%p3259_p12), %v1314_v43  ;;  %v1319_v51 = vld [vmem:[%s4861_s8 + $0x40] sm:$0xff] (!%p3259_p12)  ;;  %v1322_v52 = vld [vmem:[%s4861_s8 + $0x58] sm:$0xff] (!%p3259_p12)  ;;  %v1321_v53 = vld [vmem:[%s4861_s8 + $0x50] sm:$0xff] (!%p3259_p12) }
 0x1de   : > { %v1324_v54 = vld [vmem:[%s4861_s8 + $0x68] sm:$0xff] (!%p3259_p12)  ;;  %v1323_v55 = vld [vmem:[%s4861_s8 + $0x60] sm:$0xff] (!%p3259_p12)  ;;  %v1326_v56 = vld [vmem:[%s4861_s8 + $0x78] sm:$0xff] (!%p3259_p12) }
 0x1df   : > { %v1325_v57 = vld [vmem:[%s4861_s8 + $0x70] sm:$0xff] (!%p3259_p12)  ;;  %v4251_v59 = vld [vmem:[%s4754_s7 + $0x20] sm:$0xff] (!%p3259_p12)   ;;  %v4253_v61 = vld [vmem:[%s4754_s7 + $0x28] sm:$0xff] (!%p3259_p12)  }
 0x1e0   : > { %1378 = vmatpush1.bf16.msra.mxu0 (!%p3259_p12), %v1313_v45  ;;  %4086 = vmatpush1.bf16.msra.mxu1 (!%p3259_p12), %v1313_v45  ;;  %v4255_v63 = vld [vmem:[%s4754_s7 + $0x30] sm:$0xff] (!%p3259_p12)   ;;  %v4256_v0 = vld [vmem:[%s4754_s7 + $0x18] sm:$0xff] (!%p3259_p12)   ;;  %v1258_v2 = vld [vmem:[#allocation5] sm:$0xff] (!%p3259_p12) }
 0x1e1   : > { %1379 = vmatprep.subr.bf16.mxu0 %v1316_v46  ;;  %4079 = vmatprep.subr.bf16.mxu1 %v1316_v46  ;;  %v4257_v1 = vld [vmem:[%s4754_s7 + $0x38] sm:$0xff]   ;;  %v1274_v3 = vld [vmem:[#allocation5 + $0x80] sm:$0xff]  ;;  %v1259_v4 = vld [vmem:[#allocation5 + $0x8] sm:$0xff] }
 0x1e2   : > { %v1275_v5 = vld [vmem:[#allocation5 + $0x88] sm:$0xff]  ;;  %v1260_v8 = vld [vmem:[#allocation5 + $0x10] sm:$0xff]  ;;  %v1261_v14 = vld [vmem:[#allocation5 + $0x18] sm:$0xff] }
 0x1e3   : > { %v1276_v9 = vld [vmem:[#allocation5 + $0x90] sm:$0xff]  ;;  %v1277_v15 = vld [vmem:[#allocation5 + $0x98] sm:$0xff]  ;;  %v1262_v26 = vld [vmem:[#allocation5 + $0x20] sm:$0xff] }
 0x1e4   : > { %1380 = vmatpush1.bf16.msra.mxu0 %v1315_v47  ;;  %4087 = vmatpush1.bf16.msra.mxu1 %v1315_v47  ;;  %v1278_v27 = vld [vmem:[#allocation5 + $0xa0] sm:$0xff]  ;;  %v1263_v28 = vld [vmem:[#allocation5 + $0x28] sm:$0xff]  ;;  %v1264_v32 = vld [vmem:[#allocation5 + $0x30] sm:$0xff] }
 0x1e5   : > { %1381 = vmatprep.subr.bf16.mxu0 %v1318_v48  ;;  %4080 = vmatprep.subr.bf16.mxu1 %v1318_v48  ;;  %v1279_v29 = vld [vmem:[#allocation5 + $0xa8] sm:$0xff]  ;;  %v1280_v33 = vld [vmem:[#allocation5 + $0xb0] sm:$0xff]  ;;  %v1265_v38 = vld [vmem:[#allocation5 + $0x38] sm:$0xff] }
 0x1e6   : > { %v1281_v39 = vld [vmem:[#allocation5 + $0xb8] sm:$0xff] }
 0x1e8   : > { %1382 = vmatpush1.bf16.msra.mxu0 %v1317_v49  ;;  %4088 = vmatpush1.bf16.msra.mxu1 %v1317_v49 }
 0x1e9   : > { %1383 = vmatprep.subr.bf16.mxu0 %v1320_v50  ;;  %4081 = vmatprep.subr.bf16.mxu1 %v1320_v50  ;;  %v1266_v50 = vld [vmem:[#allocation5 + $0x40] sm:$0xff] }
 0x1ec   : > { %1384 = vmatpush1.bf16.msra.mxu0 %v1319_v51  ;;  %4089 = vmatpush1.bf16.msra.mxu1 %v1319_v51  ;;  %v1282_v51 = vld [vmem:[#allocation5 + $0xc0] sm:$0xff] }
 0x1ed   : > { %1385 = vmatprep.subr.bf16.mxu0 %v1322_v52  ;;  %4082 = vmatprep.subr.bf16.mxu1 %v1322_v52  ;;  %v1267_v52 = vld [vmem:[#allocation5 + $0x48] sm:$0xff] }
 0x1f0   : > { %1386 = vmatpush1.bf16.msra.mxu0 %v1321_v53  ;;  %4090 = vmatpush1.bf16.msra.mxu1 %v1321_v53  ;;  %v1283_v53 = vld [vmem:[#allocation5 + $0xc8] sm:$0xff] }
 0x1f1   : > { %1387 = vmatprep.subr.bf16.mxu0 %v1324_v54  ;;  %4083 = vmatprep.subr.bf16.mxu1 %v1324_v54 }
 0x1f4   : > { %1388 = vmatpush1.bf16.msra.mxu0 %v1323_v55  ;;  %4091 = vmatpush1.bf16.msra.mxu1 %v1323_v55 }
 0x1f5   : > { %1389 = vmatprep.subr.bf16.mxu0 %v1326_v56  ;;  %4084 = vmatprep.subr.bf16.mxu1 %v1326_v56  ;;  %v1268_v56 = vld [vmem:[#allocation5 + $0x50] sm:$0xff] }
 0x1f8   : > { %1390 = vmatpush1.bf16.msra.mxu0 %v1325_v57  ;;  %4092 = vmatpush1.bf16.msra.mxu1 %v1325_v57  ;;  %v1284_v57 = vld [vmem:[#allocation5 + $0xd0] sm:$0xff] }
 0x1fb   : > { %1408 = vmatmul.mubr.bf16.vlgmr.msra.gmra.mrb[0].mxu0 %v4250_v58  ;;  %1448 = vmatmul.mubr.bf16.vlgmr.msra.gmra.mrb[0].mxu1 %v4251_v59 }
 0x1fc   : > { %1417 = vmatprep.mubr.bf16.mxu0 %v4379_v44  ;;  %1457 = vmatprep.mubr.bf16.mxu1 %v4379_v44 }
 0x203   : > { %1418 = vmatmul.mubr.bf16.gmra.mrb[4].mxu0 %v4252_v60  ;;  %1458 = vmatmul.mubr.bf16.gmra.mrb[4].mxu1 %v4253_v61 }
 0x204   : > { %1427 = vmatprep.mubr.bf16.mxu0 %v4379_v44  ;;  %1467 = vmatprep.mubr.bf16.mxu1 %v4379_v44 }
 0x20b   : > { %1428 = vmatmul.mubr.bf16.gmra.mrb[8].mxu0 %v4254_v62  ;;  %1468 = vmatmul.mubr.bf16.gmra.mrb[8].mxu1 %v4255_v63  ;;  %v1269_v62 = vld [vmem:[#allocation5 + $0x58] sm:$0xff] }
 0x20c   : > { %1437 = vmatprep.mubr.bf16.mxu0 %v4379_v44  ;;  %1477 = vmatprep.mubr.bf16.mxu1 %v4379_v44  ;;  %v1285_v63 = vld [vmem:[#allocation5 + $0xd8] sm:$0xff] }
 0x213   : > { %1438 = vmatmul.mubr.bf16.gmra.mrb[12].mxu0 %v4256_v0  ;;  %1478 = vmatmul.mubr.bf16.gmra.mrb[12].mxu1 %v4257_v1 }
 0x2ce   : > { %v1409_v6 = vpop.f32.mrb[0].mxu0  ;;  %v1449_v7 = vpop.f32.mrb[0].mxu1 }
 0x2cf   : > { %v1488_v10 = vadd.f32 %v1409_v6, %v1258_v2  ;;  %v1504_v11 = vadd.f32 %v1449_v7, %v1274_v3  ;;  %v1411_v12 = vpop.f32.mrb[1].mxu0  ;;  %v1451_v13 = vpop.f32.mrb[1].mxu1 }
 0x2d0   : > { %v1489_v16 = vadd.f32 %v1411_v12, %v1259_v4  ;;  %v1505_v17 = vadd.f32 %v1451_v13, %v1275_v5  ;;  %v1413_v18 = vpop.f32.mrb[2].mxu0  ;;  %v1453_v19 = vpop.f32.mrb[2].mxu1  ;;  %v1271_v12 = vld [vmem:[#allocation5 + $0x68] sm:$0xff] }
 0x2d1   : > { %1520 = vst [vmem:[#allocation5] sm:$0xff] %v1488_v10  ;;  %1536 = vst [vmem:[#allocation5 + $0x80] sm:$0xff] %v1504_v11  ;;  %v1490_v20 = vadd.f32 %v1413_v18, %v1260_v8  ;;  %v1506_v21 = vadd.f32 %v1453_v19, %v1276_v9  ;;  %v1415_v22 = vpop.f32.mrb[3].mxu0  ;;  %v1455_v23 = vpop.f32.mrb[3].mxu1  ;;  %v1270_v10 = vld [vmem:[#allocation5 + $0x60] sm:$0xff]  ;;  %v1287_v13 = vld [vmem:[#allocation5 + $0xe8] sm:$0xff] }
 0x2d2   : > { %1521 = vst [vmem:[#allocation5 + $0x8] sm:$0xff] %v1489_v16  ;;  %1537 = vst [vmem:[#allocation5 + $0x88] sm:$0xff] %v1505_v17  ;;  %v1491_v24 = vadd.f32 %v1415_v22, %v1261_v14  ;;  %v1507_v25 = vadd.f32 %v1455_v23, %v1277_v15  ;;  %v1286_v11 = vld [vmem:[#allocation5 + $0xe0] sm:$0xff]  ;;  %v1272_v16 = vld [vmem:[#allocation5 + $0x70] sm:$0xff] }
 0x2d3   : > { %1522 = vst [vmem:[#allocation5 + $0x10] sm:$0xff] %v1490_v20  ;;  %1538 = vst [vmem:[#allocation5 + $0x90] sm:$0xff] %v1506_v21  ;;  %v1288_v17 = vld [vmem:[#allocation5 + $0xf0] sm:$0xff]  ;;  %v1273_v22 = vld [vmem:[#allocation5 + $0x78] sm:$0xff] }
 0x2d4   : > { %1523 = vst [vmem:[#allocation5 + $0x18] sm:$0xff] %v1491_v24  ;;  %1539 = vst [vmem:[#allocation5 + $0x98] sm:$0xff] %v1507_v25  ;;  %v1289_v23 = vld [vmem:[#allocation5 + $0xf8] sm:$0xff] }
 0x2d6   : > { %v1419_v30 = vpop.f32.mrb[4].mxu0  ;;  %v1459_v31 = vpop.f32.mrb[4].mxu1 }
 0x2d7   : > { %v1492_v34 = vadd.f32 %v1419_v30, %v1262_v26  ;;  %v1508_v35 = vadd.f32 %v1459_v31, %v1278_v27  ;;  %v1421_v36 = vpop.f32.mrb[5].mxu0  ;;  %v1461_v37 = vpop.f32.mrb[5].mxu1 }
 0x2d8   : > { %v1493_v40 = vadd.f32 %v1421_v36, %v1263_v28  ;;  %v1509_v41 = vadd.f32 %v1461_v37, %v1279_v29  ;;  %v1423_v42 = vpop.f32.mrb[6].mxu0  ;;  %v1463_v43 = vpop.f32.mrb[6].mxu1 }
 0x2d9   : > { %1524 = vst [vmem:[#allocation5 + $0x20] sm:$0xff] %v1492_v34  ;;  %1540 = vst [vmem:[#allocation5 + $0xa0] sm:$0xff] %v1508_v35  ;;  %v1494_v44 = vadd.f32 %v1423_v42, %v1264_v32  ;;  %v1510_v45 = vadd.f32 %v1463_v43, %v1280_v33  ;;  %v1425_v46 = vpop.f32.mrb[7].mxu0  ;;  %v1465_v47 = vpop.f32.mrb[7].mxu1 }
 0x2da   : > { %1525 = vst [vmem:[#allocation5 + $0x28] sm:$0xff] %v1493_v40  ;;  %1541 = vst [vmem:[#allocation5 + $0xa8] sm:$0xff] %v1509_v41  ;;  %v1495_v48 = vadd.f32 %v1425_v46, %v1265_v38  ;;  %v1511_v49 = vadd.f32 %v1465_v47, %v1281_v39 }
 0x2db   : > { %1526 = vst [vmem:[#allocation5 + $0x30] sm:$0xff] %v1494_v44  ;;  %1542 = vst [vmem:[#allocation5 + $0xb0] sm:$0xff] %v1510_v45 }
 0x2dc   : > { %1527 = vst [vmem:[#allocation5 + $0x38] sm:$0xff] %v1495_v48  ;;  %1543 = vst [vmem:[#allocation5 + $0xb8] sm:$0xff] %v1511_v49 }
 0x2de   : > { %v1429_v54 = vpop.f32.mrb[8].mxu0  ;;  %v1469_v55 = vpop.f32.mrb[8].mxu1 }
 0x2df   : > { %v1496_v58 = vadd.f32 %v1429_v54, %v1266_v50  ;;  %v1512_v59 = vadd.f32 %v1469_v55, %v1282_v51  ;;  %v1431_v60 = vpop.f32.mrb[9].mxu0  ;;  %v1471_v61 = vpop.f32.mrb[9].mxu1 }
 0x2e0   : > { %v1497_v0 = vadd.f32 %v1431_v60, %v1267_v52  ;;  %v1513_v1 = vadd.f32 %v1471_v61, %v1283_v53  ;;  %v1433_v2 = vpop.f32.mrb[10].mxu0  ;;  %v1473_v3 = vpop.f32.mrb[10].mxu1 }
 0x2e1   : > { %1528 = vst [vmem:[#allocation5 + $0x40] sm:$0xff] %v1496_v58  ;;  %1544 = vst [vmem:[#allocation5 + $0xc0] sm:$0xff] %v1512_v59  ;;  %v1498_v4 = vadd.f32 %v1433_v2, %v1268_v56  ;;  %v1514_v5 = vadd.f32 %v1473_v3, %v1284_v57  ;;  %v1435_v6 = vpop.f32.mrb[11].mxu0  ;;  %v1475_v7 = vpop.f32.mrb[11].mxu1 }
 0x2e2   : > { %1529 = vst [vmem:[#allocation5 + $0x48] sm:$0xff] %v1497_v0  ;;  %1545 = vst [vmem:[#allocation5 + $0xc8] sm:$0xff] %v1513_v1  ;;  %v1499_v8 = vadd.f32 %v1435_v6, %v1269_v62  ;;  %v1515_v9 = vadd.f32 %v1475_v7, %v1285_v63 }
 0x2e3   : > { %1530 = vst [vmem:[#allocation5 + $0x50] sm:$0xff] %v1498_v4  ;;  %1546 = vst [vmem:[#allocation5 + $0xd0] sm:$0xff] %v1514_v5 }
 0x2e4   : > { %1531 = vst [vmem:[#allocation5 + $0x58] sm:$0xff] %v1499_v8  ;;  %1547 = vst [vmem:[#allocation5 + $0xd8] sm:$0xff] %v1515_v9 }
 0x2e6   : > { %v1439_v14 = vpop.f32.mrb[12].mxu0  ;;  %v1479_v15 = vpop.f32.mrb[12].mxu1 }
 0x2e7   : > { %v1500_v18 = vadd.f32 %v1439_v14, %v1270_v10  ;;  %v1516_v19 = vadd.f32 %v1479_v15, %v1286_v11  ;;  %v1441_v20 = vpop.f32.mrb[13].mxu0  ;;  %v1481_v21 = vpop.f32.mrb[13].mxu1 }
 0x2e8   : > { %v1501_v24 = vadd.f32 %v1441_v20, %v1271_v12  ;;  %v1517_v25 = vadd.f32 %v1481_v21, %v1287_v13  ;;  %v1443_v26 = vpop.f32.mrb[14].mxu0  ;;  %v1483_v27 = vpop.f32.mrb[14].mxu1 }
 0x2e9   : > { %1532 = vst [vmem:[#allocation5 + $0x60] sm:$0xff] %v1500_v18  ;;  %1548 = vst [vmem:[#allocation5 + $0xe0] sm:$0xff] %v1516_v19  ;;  %v1502_v28 = vadd.f32 %v1443_v26, %v1272_v16  ;;  %v1518_v29 = vadd.f32 %v1483_v27, %v1288_v17  ;;  %v1445_v30 = vpop.f32.mrb[15].mxu0  ;;  %v1485_v31 = vpop.f32.mrb[15].mxu1 }
 0x2ea   : > { %1533 = vst [vmem:[#allocation5 + $0x68] sm:$0xff] %v1501_v24  ;;  %1549 = vst [vmem:[#allocation5 + $0xe8] sm:$0xff] %v1517_v25  ;;  %v1503_v32 = vadd.f32 %v1445_v30, %v1273_v22  ;;  %v1519_v33 = vadd.f32 %v1485_v31, %v1289_v23 }
 0x2eb   : > { %1534 = vst [vmem:[#allocation5 + $0x70] sm:$0xff] %v1502_v28  ;;  %1550 = vst [vmem:[#allocation5 + $0xf0] sm:$0xff] %v1518_v29 }
 0x2ec   : > { %1535 = vst [vmem:[#allocation5 + $0x78] sm:$0xff] %v1503_v32  ;;  %1551 = vst [vmem:[#allocation5 + $0xf8] sm:$0xff] %v1519_v33 }
 0x2ed PF: > { %s5328_s9 = sld [smem:[#allocation13_spill]] }
 0x2f3   : > { %p1552_p13 = scmp.eq.s32.totalorder %s5328_s9, 1  ;;  %p3270_p0 = scmp.ne.s32.totalorder %s5328_s9, 1 }
 0x2f4   : > { %s4898_s0 = scalar_lea.vmem (!%p3270_p0), [#allocation3], %s4726_s11  ;;  %v4380_v37 = vmov (!%p3270_p0), 0   ;;  %v4258_v51 = vld [vmem:[%s4754_s7] sm:$0xff] (!%p3270_p0)   ;;  %v4260_v53 = vld [vmem:[%s4754_s7 + $0x8] sm:$0xff] (!%p3270_p0)   ;;  %v4262_v55 = vld [vmem:[%s4754_s7 + $0x10] sm:$0xff] (!%p3270_p0)  }
 0x2f5   : > { %1555 = sbr.rel (%p3270_p0) target bundleno = 1032 (0x408), region = 184  ;;  %v1610_v34 = vld [vmem:[%s4898_s0 + $0x8] sm:$0xff] (!%p3270_p0)  ;;  %v1609_v35 = vld [vmem:[%s4898_s0] sm:$0xff] (!%p3270_p0)  ;;  %v1612_v36 = vld [vmem:[%s4898_s0 + $0x18] sm:$0xff] (!%p3270_p0)  ;;  %1705 = vmatprep.mubr.bf16.mxu0 (!%p3270_p0), %v4380_v37  ;;  %1745 = vmatprep.mubr.bf16.mxu1 (!%p3270_p0), %v4380_v37 }
 0x2f6   : > { %1673 = vmatprep.subr.bf16.mxu0 (!%p3270_p0), %v1610_v34  ;;  %4093 = vmatprep.subr.bf16.mxu1 (!%p3270_p0), %v1610_v34  ;;  %v1611_v38 = vld [vmem:[%s4898_s0 + $0x10] sm:$0xff] (!%p3270_p0)  ;;  %v1614_v39 = vld [vmem:[%s4898_s0 + $0x28] sm:$0xff] (!%p3270_p0)  ;;  %v1613_v40 = vld [vmem:[%s4898_s0 + $0x20] sm:$0xff] (!%p3270_p0) }
 0x2f7   : > { %1674 = vmatpush1.bf16.msra.mxu0 (!%p3270_p0), %v1609_v35  ;;  %4101 = vmatpush1.bf16.msra.mxu1 (!%p3270_p0), %v1609_v35  ;;  %v1616_v41 = vld [vmem:[%s4898_s0 + $0x38] sm:$0xff] (!%p3270_p0)  ;;  %v1615_v42 = vld [vmem:[%s4898_s0 + $0x30] sm:$0xff] (!%p3270_p0)  ;;  %v1618_v43 = vld [vmem:[%s4898_s0 + $0x48] sm:$0xff] (!%p3270_p0) }
 0x2f8   : > { %1675 = vmatprep.subr.bf16.mxu0 (!%p3270_p0), %v1612_v36  ;;  %4094 = vmatprep.subr.bf16.mxu1 (!%p3270_p0), %v1612_v36  ;;  %v1617_v44 = vld [vmem:[%s4898_s0 + $0x40] sm:$0xff] (!%p3270_p0)  ;;  %v1620_v45 = vld [vmem:[%s4898_s0 + $0x58] sm:$0xff] (!%p3270_p0)  ;;  %v1619_v46 = vld [vmem:[%s4898_s0 + $0x50] sm:$0xff] (!%p3270_p0) }
 0x2f9   : > { %v1622_v47 = vld [vmem:[%s4898_s0 + $0x68] sm:$0xff] (!%p3270_p0)  ;;  %v1621_v48 = vld [vmem:[%s4898_s0 + $0x60] sm:$0xff] (!%p3270_p0)  ;;  %v1624_v49 = vld [vmem:[%s4898_s0 + $0x78] sm:$0xff] (!%p3270_p0) }
 0x2fa   : > { %v1623_v50 = vld [vmem:[%s4898_s0 + $0x70] sm:$0xff] (!%p3270_p0)  ;;  %v4259_v52 = vld [vmem:[%s4754_s7 + $0x20] sm:$0xff] (!%p3270_p0)   ;;  %v4261_v54 = vld [vmem:[%s4754_s7 + $0x28] sm:$0xff] (!%p3270_p0)  }
 0x2fb   : > { %1676 = vmatpush1.bf16.msra.mxu0 (!%p3270_p0), %v1611_v38  ;;  %4102 = vmatpush1.bf16.msra.mxu1 (!%p3270_p0), %v1611_v38  ;;  %v4263_v56 = vld [vmem:[%s4754_s7 + $0x30] sm:$0xff] (!%p3270_p0)   ;;  %v4264_v57 = vld [vmem:[%s4754_s7 + $0x18] sm:$0xff] (!%p3270_p0)   ;;  %v1556_v59 = vld [vmem:[#allocation5] sm:$0xff] (!%p3270_p0) }
 0x2fc   : > { %1677 = vmatprep.subr.bf16.mxu0 %v1614_v39  ;;  %4095 = vmatprep.subr.bf16.mxu1 %v1614_v39  ;;  %v4265_v58 = vld [vmem:[%s4754_s7 + $0x38] sm:$0xff]   ;;  %v1572_v60 = vld [vmem:[#allocation5 + $0x80] sm:$0xff]  ;;  %v1557_v61 = vld [vmem:[#allocation5 + $0x8] sm:$0xff] }
 0x2fd   : > { %v1573_v62 = vld [vmem:[#allocation5 + $0x88] sm:$0xff]  ;;  %v1558_v1 = vld [vmem:[#allocation5 + $0x10] sm:$0xff]  ;;  %v1559_v7 = vld [vmem:[#allocation5 + $0x18] sm:$0xff] }
 0x2fe   : > { %v1574_v2 = vld [vmem:[#allocation5 + $0x90] sm:$0xff]  ;;  %v1575_v8 = vld [vmem:[#allocation5 + $0x98] sm:$0xff]  ;;  %v1560_v19 = vld [vmem:[#allocation5 + $0x20] sm:$0xff] }
 0x2ff   : > { %1678 = vmatpush1.bf16.msra.mxu0 %v1613_v40  ;;  %4103 = vmatpush1.bf16.msra.mxu1 %v1613_v40  ;;  %v1576_v20 = vld [vmem:[#allocation5 + $0xa0] sm:$0xff]  ;;  %v1561_v21 = vld [vmem:[#allocation5 + $0x28] sm:$0xff]  ;;  %v1562_v25 = vld [vmem:[#allocation5 + $0x30] sm:$0xff] }
 0x300   : > { %1679 = vmatprep.subr.bf16.mxu0 %v1616_v41  ;;  %4096 = vmatprep.subr.bf16.mxu1 %v1616_v41  ;;  %v1577_v22 = vld [vmem:[#allocation5 + $0xa8] sm:$0xff]  ;;  %v1578_v26 = vld [vmem:[#allocation5 + $0xb0] sm:$0xff]  ;;  %v1563_v31 = vld [vmem:[#allocation5 + $0x38] sm:$0xff] }
 0x301   : > { %v1579_v32 = vld [vmem:[#allocation5 + $0xb8] sm:$0xff] }
 0x303   : > { %1680 = vmatpush1.bf16.msra.mxu0 %v1615_v42  ;;  %4104 = vmatpush1.bf16.msra.mxu1 %v1615_v42 }
 0x304   : > { %1681 = vmatprep.subr.bf16.mxu0 %v1618_v43  ;;  %4097 = vmatprep.subr.bf16.mxu1 %v1618_v43  ;;  %v1564_v43 = vld [vmem:[#allocation5 + $0x40] sm:$0xff] }
 0x307   : > { %1682 = vmatpush1.bf16.msra.mxu0 %v1617_v44  ;;  %4105 = vmatpush1.bf16.msra.mxu1 %v1617_v44  ;;  %v1580_v44 = vld [vmem:[#allocation5 + $0xc0] sm:$0xff] }
 0x308   : > { %1683 = vmatprep.subr.bf16.mxu0 %v1620_v45  ;;  %4098 = vmatprep.subr.bf16.mxu1 %v1620_v45  ;;  %v1565_v45 = vld [vmem:[#allocation5 + $0x48] sm:$0xff] }
 0x30b   : > { %1684 = vmatpush1.bf16.msra.mxu0 %v1619_v46  ;;  %4106 = vmatpush1.bf16.msra.mxu1 %v1619_v46  ;;  %v1581_v46 = vld [vmem:[#allocation5 + $0xc8] sm:$0xff] }
 0x30c   : > { %1685 = vmatprep.subr.bf16.mxu0 %v1622_v47  ;;  %4099 = vmatprep.subr.bf16.mxu1 %v1622_v47 }
 0x30f   : > { %1686 = vmatpush1.bf16.msra.mxu0 %v1621_v48  ;;  %4107 = vmatpush1.bf16.msra.mxu1 %v1621_v48 }
 0x310   : > { %1687 = vmatprep.subr.bf16.mxu0 %v1624_v49  ;;  %4100 = vmatprep.subr.bf16.mxu1 %v1624_v49  ;;  %v1566_v49 = vld [vmem:[#allocation5 + $0x50] sm:$0xff] }
 0x313   : > { %1688 = vmatpush1.bf16.msra.mxu0 %v1623_v50  ;;  %4108 = vmatpush1.bf16.msra.mxu1 %v1623_v50  ;;  %v1582_v50 = vld [vmem:[#allocation5 + $0xd0] sm:$0xff] }
 0x316   : > { %1706 = vmatmul.mubr.bf16.vlgmr.msra.gmra.mrb[0].mxu0 %v4258_v51  ;;  %1746 = vmatmul.mubr.bf16.vlgmr.msra.gmra.mrb[0].mxu1 %v4259_v52 }
 0x317   : > { %1715 = vmatprep.mubr.bf16.mxu0 %v4380_v37  ;;  %1755 = vmatprep.mubr.bf16.mxu1 %v4380_v37 }
 0x31e   : > { %1716 = vmatmul.mubr.bf16.gmra.mrb[4].mxu0 %v4260_v53  ;;  %1756 = vmatmul.mubr.bf16.gmra.mrb[4].mxu1 %v4261_v54 }
 0x31f   : > { %1725 = vmatprep.mubr.bf16.mxu0 %v4380_v37  ;;  %1765 = vmatprep.mubr.bf16.mxu1 %v4380_v37 }
 0x326   : > { %1726 = vmatmul.mubr.bf16.gmra.mrb[8].mxu0 %v4262_v55  ;;  %1766 = vmatmul.mubr.bf16.gmra.mrb[8].mxu1 %v4263_v56  ;;  %v1567_v55 = vld [vmem:[#allocation5 + $0x58] sm:$0xff] }
 0x327   : > { %1735 = vmatprep.mubr.bf16.mxu0 %v4380_v37  ;;  %1775 = vmatprep.mubr.bf16.mxu1 %v4380_v37  ;;  %v1583_v56 = vld [vmem:[#allocation5 + $0xd8] sm:$0xff] }
 0x32e   : > { %1736 = vmatmul.mubr.bf16.gmra.mrb[12].mxu0 %v4264_v57  ;;  %1776 = vmatmul.mubr.bf16.gmra.mrb[12].mxu1 %v4265_v58 }
 0x3e9   : > { %v1707_v63 = vpop.f32.mrb[0].mxu0  ;;  %v1747_v0 = vpop.f32.mrb[0].mxu1 }
 0x3ea   : > { %v1786_v3 = vadd.f32 %v1707_v63, %v1556_v59  ;;  %v1802_v4 = vadd.f32 %v1747_v0, %v1572_v60  ;;  %v1709_v5 = vpop.f32.mrb[1].mxu0  ;;  %v1749_v6 = vpop.f32.mrb[1].mxu1 }
 0x3eb   : > { %v1787_v9 = vadd.f32 %v1709_v5, %v1557_v61  ;;  %v1803_v10 = vadd.f32 %v1749_v6, %v1573_v62  ;;  %v1711_v11 = vpop.f32.mrb[2].mxu0  ;;  %v1751_v12 = vpop.f32.mrb[2].mxu1  ;;  %v1569_v5 = vld [vmem:[#allocation5 + $0x68] sm:$0xff] }
 0x3ec   : > { %1818 = vst [vmem:[#allocation5] sm:$0xff] %v1786_v3  ;;  %1834 = vst [vmem:[#allocation5 + $0x80] sm:$0xff] %v1802_v4  ;;  %v1788_v13 = vadd.f32 %v1711_v11, %v1558_v1  ;;  %v1804_v14 = vadd.f32 %v1751_v12, %v1574_v2  ;;  %v1713_v15 = vpop.f32.mrb[3].mxu0  ;;  %v1753_v16 = vpop.f32.mrb[3].mxu1  ;;  %v1568_v3 = vld [vmem:[#allocation5 + $0x60] sm:$0xff]  ;;  %v1585_v6 = vld [vmem:[#allocation5 + $0xe8] sm:$0xff] }
 0x3ed   : > { %1819 = vst [vmem:[#allocation5 + $0x8] sm:$0xff] %v1787_v9  ;;  %1835 = vst [vmem:[#allocation5 + $0x88] sm:$0xff] %v1803_v10  ;;  %v1789_v17 = vadd.f32 %v1713_v15, %v1559_v7  ;;  %v1805_v18 = vadd.f32 %v1753_v16, %v1575_v8  ;;  %v1584_v4 = vld [vmem:[#allocation5 + $0xe0] sm:$0xff]  ;;  %v1570_v9 = vld [vmem:[#allocation5 + $0x70] sm:$0xff] }
 0x3ee   : > { %1820 = vst [vmem:[#allocation5 + $0x10] sm:$0xff] %v1788_v13  ;;  %1836 = vst [vmem:[#allocation5 + $0x90] sm:$0xff] %v1804_v14  ;;  %v1586_v10 = vld [vmem:[#allocation5 + $0xf0] sm:$0xff]  ;;  %v1571_v15 = vld [vmem:[#allocation5 + $0x78] sm:$0xff] }
 0x3ef   : > { %1821 = vst [vmem:[#allocation5 + $0x18] sm:$0xff] %v1789_v17  ;;  %1837 = vst [vmem:[#allocation5 + $0x98] sm:$0xff] %v1805_v18  ;;  %v1587_v16 = vld [vmem:[#allocation5 + $0xf8] sm:$0xff] }
 0x3f1   : > { %v1717_v23 = vpop.f32.mrb[4].mxu0  ;;  %v1757_v24 = vpop.f32.mrb[4].mxu1 }
 0x3f2   : > { %v1790_v27 = vadd.f32 %v1717_v23, %v1560_v19  ;;  %v1806_v28 = vadd.f32 %v1757_v24, %v1576_v20  ;;  %v1719_v29 = vpop.f32.mrb[5].mxu0  ;;  %v1759_v30 = vpop.f32.mrb[5].mxu1 }
 0x3f3   : > { %v1791_v33 = vadd.f32 %v1719_v29, %v1561_v21  ;;  %v1807_v34 = vadd.f32 %v1759_v30, %v1577_v22  ;;  %v1721_v35 = vpop.f32.mrb[6].mxu0  ;;  %v1761_v36 = vpop.f32.mrb[6].mxu1 }
 0x3f4   : > { %1822 = vst [vmem:[#allocation5 + $0x20] sm:$0xff] %v1790_v27  ;;  %1838 = vst [vmem:[#allocation5 + $0xa0] sm:$0xff] %v1806_v28  ;;  %v1792_v37 = vadd.f32 %v1721_v35, %v1562_v25  ;;  %v1808_v38 = vadd.f32 %v1761_v36, %v1578_v26  ;;  %v1723_v39 = vpop.f32.mrb[7].mxu0  ;;  %v1763_v40 = vpop.f32.mrb[7].mxu1 }
 0x3f5   : > { %1823 = vst [vmem:[#allocation5 + $0x28] sm:$0xff] %v1791_v33  ;;  %1839 = vst [vmem:[#allocation5 + $0xa8] sm:$0xff] %v1807_v34  ;;  %v1793_v41 = vadd.f32 %v1723_v39, %v1563_v31  ;;  %v1809_v42 = vadd.f32 %v1763_v40, %v1579_v32 }
 0x3f6   : > { %1824 = vst [vmem:[#allocation5 + $0x30] sm:$0xff] %v1792_v37  ;;  %1840 = vst [vmem:[#allocation5 + $0xb0] sm:$0xff] %v1808_v38 }
 0x3f7   : > { %1825 = vst [vmem:[#allocation5 + $0x38] sm:$0xff] %v1793_v41  ;;  %1841 = vst [vmem:[#allocation5 + $0xb8] sm:$0xff] %v1809_v42 }
 0x3f9   : > { %v1727_v47 = vpop.f32.mrb[8].mxu0  ;;  %v1767_v48 = vpop.f32.mrb[8].mxu1 }
 0x3fa   : > { %v1794_v51 = vadd.f32 %v1727_v47, %v1564_v43  ;;  %v1810_v52 = vadd.f32 %v1767_v48, %v1580_v44  ;;  %v1729_v53 = vpop.f32.mrb[9].mxu0  ;;  %v1769_v54 = vpop.f32.mrb[9].mxu1 }
 0x3fb   : > { %v1795_v57 = vadd.f32 %v1729_v53, %v1565_v45  ;;  %v1811_v58 = vadd.f32 %v1769_v54, %v1581_v46  ;;  %v1731_v59 = vpop.f32.mrb[10].mxu0  ;;  %v1771_v60 = vpop.f32.mrb[10].mxu1 }
 0x3fc   : > { %1826 = vst [vmem:[#allocation5 + $0x40] sm:$0xff] %v1794_v51  ;;  %1842 = vst [vmem:[#allocation5 + $0xc0] sm:$0xff] %v1810_v52  ;;  %v1796_v61 = vadd.f32 %v1731_v59, %v1566_v49  ;;  %v1812_v62 = vadd.f32 %v1771_v60, %v1582_v50  ;;  %v1733_v63 = vpop.f32.mrb[11].mxu0  ;;  %v1773_v0 = vpop.f32.mrb[11].mxu1 }
 0x3fd   : > { %1827 = vst [vmem:[#allocation5 + $0x48] sm:$0xff] %v1795_v57  ;;  %1843 = vst [vmem:[#allocation5 + $0xc8] sm:$0xff] %v1811_v58  ;;  %v1797_v1 = vadd.f32 %v1733_v63, %v1567_v55  ;;  %v1813_v2 = vadd.f32 %v1773_v0, %v1583_v56 }
 0x3fe   : > { %1828 = vst [vmem:[#allocation5 + $0x50] sm:$0xff] %v1796_v61  ;;  %1844 = vst [vmem:[#allocation5 + $0xd0] sm:$0xff] %v1812_v62 }
 0x3ff   : > { %1829 = vst [vmem:[#allocation5 + $0x58] sm:$0xff] %v1797_v1  ;;  %1845 = vst [vmem:[#allocation5 + $0xd8] sm:$0xff] %v1813_v2 }
 0x401   : > { %v1737_v7 = vpop.f32.mrb[12].mxu0  ;;  %v1777_v8 = vpop.f32.mrb[12].mxu1 }
 0x402   : > { %v1798_v11 = vadd.f32 %v1737_v7, %v1568_v3  ;;  %v1814_v12 = vadd.f32 %v1777_v8, %v1584_v4  ;;  %v1739_v13 = vpop.f32.mrb[13].mxu0  ;;  %v1779_v14 = vpop.f32.mrb[13].mxu1 }
 0x403   : > { %v1799_v17 = vadd.f32 %v1739_v13, %v1569_v5  ;;  %v1815_v18 = vadd.f32 %v1779_v14, %v1585_v6  ;;  %v1741_v19 = vpop.f32.mrb[14].mxu0  ;;  %v1781_v20 = vpop.f32.mrb[14].mxu1 }
 0x404   : > { %1830 = vst [vmem:[#allocation5 + $0x60] sm:$0xff] %v1798_v11  ;;  %1846 = vst [vmem:[#allocation5 + $0xe0] sm:$0xff] %v1814_v12  ;;  %v1800_v21 = vadd.f32 %v1741_v19, %v1570_v9  ;;  %v1816_v22 = vadd.f32 %v1781_v20, %v1586_v10  ;;  %v1743_v23 = vpop.f32.mrb[15].mxu0  ;;  %v1783_v24 = vpop.f32.mrb[15].mxu1 }
 0x405   : > { %1831 = vst [vmem:[#allocation5 + $0x68] sm:$0xff] %v1799_v17  ;;  %1847 = vst [vmem:[#allocation5 + $0xe8] sm:$0xff] %v1815_v18  ;;  %v1801_v25 = vadd.f32 %v1743_v23, %v1571_v15  ;;  %v1817_v26 = vadd.f32 %v1783_v24, %v1587_v16 }
 0x406   : > { %1832 = vst [vmem:[#allocation5 + $0x70] sm:$0xff] %v1800_v21  ;;  %1848 = vst [vmem:[#allocation5 + $0xf0] sm:$0xff] %v1816_v22 }
 0x407   : > { %1833 = vst [vmem:[#allocation5 + $0x78] sm:$0xff] %v1801_v25  ;;  %1849 = vst [vmem:[#allocation5 + $0xf8] sm:$0xff] %v1817_v26 }
 0x408 PF: > { %s5329_s7 = sld [smem:[#allocation13_spill]] }
 0x40e   : > { %p1850_p1 = scmp.eq.s32.totalorder %s5329_s7, 2  ;;  %p3281_p2 = scmp.ne.s32.totalorder %s5329_s7, 2 }
 0x40f   : > { %s1886_s30 = sshra.s32 (!%p3281_p2), %s4726_s11, 4  ;;  %v4266_v27 = vld [vmem:[%s4757_s1] sm:$0xff] (!%p3281_p2)   ;;  %v4268_v37 = vld [vmem:[%s4757_s1 + $0x8] sm:$0xff] (!%p3281_p2)   ;;  %v4270_v39 = vld [vmem:[%s4757_s1 + $0x10] sm:$0xff] (!%p3281_p2)  }
 0x410   : > { %1853 = sbr.rel (%p3281_p2) target bundleno = 1301 (0x515), region = 188  ;;  %s3282_s24 = sshll.u32 (!%p3281_p2), %s1886_s30, 3  ;;  %v4267_v28 = vld [vmem:[%s4757_s1 + $0x20] sm:$0xff] (!%p3281_p2)   ;;  %3749 = vmatprep.mubr.bf16.mxu0 (!%p3281_p2), %v4266_v27  ;;  %v4269_v38 = vld [vmem:[%s4757_s1 + $0x28] sm:$0xff] (!%p3281_p2)   ;;  %v4271_v40 = vld [vmem:[%s4757_s1 + $0x30] sm:$0xff] (!%p3281_p2)  }
 0x411   : > { %s4937_s26 = scalar_lea.vmem (!%p3281_p2), [#allocation4], %s3282_s24  ;;  %3757 = vmatprep.mubr.bf16.mxu1 (!%p3281_p2), %v4267_v28  ;;  %v4272_v41 = vld [vmem:[%s4757_s1 + $0x18] sm:$0xff] (!%p3281_p2)   ;;  %v1856_v43 = vld [vmem:[#allocation5 + $0x20] sm:$0xff] (!%p3281_p2)  ;;  %v1857_v49 = vld [vmem:[#allocation5 + $0x30] sm:$0xff] (!%p3281_p2) }
 0x412   : > { %v1890_v29 = vld [vmem:[%s4937_s26] sm:$0xff] (!%p3281_p2)  ;;  %v1891_v30 = vld [vmem:[%s4937_s26 + $0x8] sm:$0xff] (!%p3281_p2)  ;;  %v1892_v31 = vld [vmem:[%s4937_s26 + $0x10] sm:$0xff] (!%p3281_p2) }
 0x413   : > { %3733 = vmatprep.subr.bf16.mxu0 (!%p3281_p2), %v1890_v29  ;;  %4109 = vmatprep.subr.bf16.mxu1 (!%p3281_p2), %v1890_v29  ;;  %v1893_v32 = vld [vmem:[%s4937_s26 + $0x18] sm:$0xff] (!%p3281_p2)  ;;  %v1894_v33 = vld [vmem:[%s4937_s26 + $0x20] sm:$0xff] (!%p3281_p2)  ;;  %v1895_v34 = vld [vmem:[%s4937_s26 + $0x28] sm:$0xff] (!%p3281_p2) }
 0x414   : > { %3734 = vmatpush3.bf16.msra.mxu0 (!%p3281_p2), %v1890_v29  ;;  %4117 = vmatpush3.bf16.msra.mxu1 (!%p3281_p2), %v1890_v29  ;;  %v1896_v35 = vld [vmem:[%s4937_s26 + $0x30] sm:$0xff] (!%p3281_p2)  ;;  %v1897_v36 = vld [vmem:[%s4937_s26 + $0x38] sm:$0xff] (!%p3281_p2)  ;;  %v1864_v44 = vld [vmem:[#allocation5 + $0xa0] sm:$0xff] (!%p3281_p2) }
 0x415   : > { %3735 = vmatprep.subr.bf16.mxu0 (!%p3281_p2), %v1891_v30  ;;  %4110 = vmatprep.subr.bf16.mxu1 (!%p3281_p2), %v1891_v30  ;;  %v4273_v42 = vld [vmem:[%s4757_s1 + $0x38] sm:$0xff] (!%p3281_p2)   ;;  %v1854_v45 = vld [vmem:[#allocation5] sm:$0xff] (!%p3281_p2)  ;;  %v1865_v50 = vld [vmem:[#allocation5 + $0xb0] sm:$0xff] (!%p3281_p2) }
 0x416   : > { %v1862_v46 = vld [vmem:[#allocation5 + $0x80] sm:$0xff] (!%p3281_p2)  ;;  %v1855_v55 = vld [vmem:[#allocation5 + $0x10] sm:$0xff] (!%p3281_p2) }
 0x417   : > { %v1863_v56 = vld [vmem:[#allocation5 + $0x90] sm:$0xff]  ;;  %v1860_v3 = vld [vmem:[#allocation5 + $0x60] sm:$0xff] }
 0x418   : > { %3736 = vmatpush3.bf16.msra.mxu0 %v1891_v30  ;;  %4118 = vmatpush3.bf16.msra.mxu1 %v1891_v30  ;;  %v1868_v4 = vld [vmem:[#allocation5 + $0xe0] sm:$0xff]  ;;  %v1861_v9 = vld [vmem:[#allocation5 + $0x70] sm:$0xff] }
 0x419   : > { %3737 = vmatprep.subr.bf16.mxu0 %v1892_v31  ;;  %4111 = vmatprep.subr.bf16.mxu1 %v1892_v31  ;;  %v1858_v5 = vld [vmem:[#allocation5 + $0x40] sm:$0xff]  ;;  %v1869_v10 = vld [vmem:[#allocation5 + $0xf0] sm:$0xff] }
 0x41a   : > { %v1866_v6 = vld [vmem:[#allocation5 + $0xc0] sm:$0xff]  ;;  %v1859_v15 = vld [vmem:[#allocation5 + $0x50] sm:$0xff] }
 0x41b   : > { %v1867_v16 = vld [vmem:[#allocation5 + $0xd0] sm:$0xff] }
 0x41c   : > { %3738 = vmatpush3.bf16.msra.mxu0 %v1892_v31  ;;  %4119 = vmatpush3.bf16.msra.mxu1 %v1892_v31 }
 0x41d   : > { %3739 = vmatprep.subr.bf16.mxu0 %v1893_v32  ;;  %4112 = vmatprep.subr.bf16.mxu1 %v1893_v32 }
 0x420   : > { %3740 = vmatpush3.bf16.msra.mxu0 %v1893_v32  ;;  %4120 = vmatpush3.bf16.msra.mxu1 %v1893_v32 }
 0x421   : > { %3741 = vmatprep.subr.bf16.mxu0 %v1894_v33  ;;  %4113 = vmatprep.subr.bf16.mxu1 %v1894_v33 }
 0x424   : > { %3742 = vmatpush3.bf16.msra.mxu0 %v1894_v33  ;;  %4121 = vmatpush3.bf16.msra.mxu1 %v1894_v33 }
 0x425   : > { %3743 = vmatprep.subr.bf16.mxu0 %v1895_v34  ;;  %4114 = vmatprep.subr.bf16.mxu1 %v1895_v34 }
 0x428   : > { %3744 = vmatpush3.bf16.msra.mxu0 %v1895_v34  ;;  %4122 = vmatpush3.bf16.msra.mxu1 %v1895_v34 }
 0x429   : > { %3745 = vmatprep.subr.bf16.mxu0 %v1896_v35  ;;  %4115 = vmatprep.subr.bf16.mxu1 %v1896_v35 }
 0x42c   : > { %3746 = vmatpush3.bf16.msra.mxu0 %v1896_v35  ;;  %4123 = vmatpush3.bf16.msra.mxu1 %v1896_v35 }
 0x42d   : > { %3747 = vmatprep.subr.bf16.mxu0 %v1897_v36  ;;  %4116 = vmatprep.subr.bf16.mxu1 %v1897_v36 }
 0x430   : > { %3748 = vmatpush3.bf16.msra.mxu0 %v1897_v36  ;;  %4124 = vmatpush3.bf16.msra.mxu1 %v1897_v36 }
 0x433   : > { %3750 = vmatmul.mubr.bf16.vlgmr.msra.gmra.mrb[0].mxu0 %v4268_v37  ;;  %3758 = vmatmul.mubr.bf16.vlgmr.msra.gmra.mrb[0].mxu1 %v4269_v38 }
 0x434   : > { %3753 = vmatprep.mubr.bf16.mxu0 %v4270_v39  ;;  %3761 = vmatprep.mubr.bf16.mxu1 %v4271_v40 }
 0x43b   : > { %3754 = vmatmul.mubr.bf16.gmra.mrb[4].mxu0 %v4272_v41  ;;  %3762 = vmatmul.mubr.bf16.gmra.mrb[4].mxu1 %v4273_v42 }
 0x506   : > { %v3751_v47 = vpop.f32.mrb[0].mxu0  ;;  %v3759_v48 = vpop.f32.mrb[0].mxu1 }
 0x507   : > { %v2045_v51 = vadd.f32 %v3751_v47, %v1856_v43  ;;  %v2053_v52 = vadd.f32 %v3759_v48, %v1864_v44  ;;  %v1980_v53 = vpop.f32.mrb[1].mxu0  ;;  %v2012_v54 = vpop.f32.mrb[1].mxu1 }
 0x508   : > { %v2043_v57 = vadd.f32 %v1980_v53, %v1854_v45  ;;  %v2051_v58 = vadd.f32 %v2012_v54, %v1862_v46  ;;  %v3752_v59 = vpop.f32.mrb[2].mxu0  ;;  %v3760_v60 = vpop.f32.mrb[2].mxu1 }
 0x509   : > { %2061 = vst [vmem:[#allocation5 + $0x20] sm:$0xff] %v2045_v51  ;;  %2069 = vst [vmem:[#allocation5 + $0xa0] sm:$0xff] %v2053_v52  ;;  %v2046_v61 = vadd.f32 %v3752_v59, %v1857_v49  ;;  %v2054_v62 = vadd.f32 %v3760_v60, %v1865_v50  ;;  %v1983_v63 = vpop.f32.mrb[3].mxu0  ;;  %v2015_v0 = vpop.f32.mrb[3].mxu1 }
 0x50a   : > { %2059 = vst [vmem:[#allocation5] sm:$0xff] %v2043_v57  ;;  %2067 = vst [vmem:[#allocation5 + $0x80] sm:$0xff] %v2051_v58  ;;  %v2044_v1 = vadd.f32 %v1983_v63, %v1855_v55  ;;  %v2052_v2 = vadd.f32 %v2015_v0, %v1863_v56 }
 0x50b   : > { %2062 = vst [vmem:[#allocation5 + $0x30] sm:$0xff] %v2046_v61  ;;  %2070 = vst [vmem:[#allocation5 + $0xb0] sm:$0xff] %v2054_v62 }
 0x50c   : > { %2060 = vst [vmem:[#allocation5 + $0x10] sm:$0xff] %v2044_v1  ;;  %2068 = vst [vmem:[#allocation5 + $0x90] sm:$0xff] %v2052_v2 }
 0x50e   : > { %v3755_v7 = vpop.f32.mrb[4].mxu0  ;;  %v3763_v8 = vpop.f32.mrb[4].mxu1 }
 0x50f   : > { %v2049_v11 = vadd.f32 %v3755_v7, %v1860_v3  ;;  %v2057_v12 = vadd.f32 %v3763_v8, %v1868_v4  ;;  %v1996_v13 = vpop.f32.mrb[5].mxu0  ;;  %v2028_v14 = vpop.f32.mrb[5].mxu1 }
 0x510   : > { %v2047_v17 = vadd.f32 %v1996_v13, %v1858_v5  ;;  %v2055_v18 = vadd.f32 %v2028_v14, %v1866_v6  ;;  %v3756_v19 = vpop.f32.mrb[6].mxu0  ;;  %v3764_v20 = vpop.f32.mrb[6].mxu1 }
 0x511   : > { %2065 = vst [vmem:[#allocation5 + $0x60] sm:$0xff] %v2049_v11  ;;  %2073 = vst [vmem:[#allocation5 + $0xe0] sm:$0xff] %v2057_v12  ;;  %v2050_v21 = vadd.f32 %v3756_v19, %v1861_v9  ;;  %v2058_v22 = vadd.f32 %v3764_v20, %v1869_v10  ;;  %v1999_v23 = vpop.f32.mrb[7].mxu0  ;;  %v2031_v24 = vpop.f32.mrb[7].mxu1 }
 0x512   : > { %2063 = vst [vmem:[#allocation5 + $0x40] sm:$0xff] %v2047_v17  ;;  %2071 = vst [vmem:[#allocation5 + $0xc0] sm:$0xff] %v2055_v18  ;;  %v2048_v25 = vadd.f32 %v1999_v23, %v1859_v15  ;;  %v2056_v26 = vadd.f32 %v2031_v24, %v1867_v16 }
 0x513   : > { %2066 = vst [vmem:[#allocation5 + $0x70] sm:$0xff] %v2050_v21  ;;  %2074 = vst [vmem:[#allocation5 + $0xf0] sm:$0xff] %v2058_v22 }
 0x514   : > { %2064 = vst [vmem:[#allocation5 + $0x50] sm:$0xff] %v2048_v25  ;;  %2072 = vst [vmem:[#allocation5 + $0xd0] sm:$0xff] %v2056_v26 }
 0x515 PF: > { %s5330_s11 = sld [smem:[#allocation11_spill]] }
 0x51b   : > { %p2075_p3 = scmp.eq.s32.totalorder %s5330_s11, 2 }
 0x51d   : > { %p2076_p4 = pnand %p2075_p3, %p903_p8 }
 0x51e   : > { %s5332_s16 = sld [smem:[#allocation20_spill]] (!%p2076_p4)  ;;  %v2080_v38 = vld [vmem:[#allocation5] sm:$0xff] (!%p2076_p4)  ;;  %v2081_v39 = vld [vmem:[#allocation5 + $0x8] sm:$0xff] (!%p2076_p4)  ;;  %v4982_v41 = vld [vmem:[#allocation5 + $0x10] sm:$0xff] (!%p2076_p4) }
 0x51f   : > { %2079 = sbr.rel (%p2076_p4) target bundleno = 1596 (0x63c), region = 192  ;;  %3797 = vmatprep.mubr.f32.mxu0 (!%p2076_p4), %v2080_v38  ;;  %v3350_v40 = vpack.c.bf16 (!%p2076_p4), %v2081_v39, %v2080_v38  ;;  %3853 = vmatprep.mubr.f32.mxu1 (!%p2076_p4), %v2081_v39  ;;  %v4984_v42 = vld [vmem:[#allocation5 + $0x18] sm:$0xff] (!%p2076_p4)  ;;  %v4986_v43 = vld [vmem:[#allocation5 + $0x20] sm:$0xff] (!%p2076_p4)  ;;  %v4990_v45 = vld [vmem:[#allocation5 + $0x28] sm:$0xff] (!%p2076_p4) }
 0x520   : > { %v3351_v44 = vpack.c.bf16 (!%p2076_p4), %v4984_v42, %v4982_v41  ;;  %v4992_v46 = vld [vmem:[#allocation5 + $0x30] sm:$0xff] (!%p2076_p4)  ;;  %v4994_v47 = vld [vmem:[#allocation5 + $0x38] sm:$0xff] (!%p2076_p4)  ;;  %v3352_v50 = vpack.c.bf16 (!%p2076_p4), %v4990_v45, %v4986_v43  ;;  %v5007_v52 = vld [vmem:[#allocation5 + $0x40] sm:$0xff] (!%p2076_p4) }
 0x521   : > { %2208 = vst [vmem:[%s4731_s23] sm:$0xff] (!%p2076_p4), %v3350_v40  ;;  %v3353_v51 = vpack.c.bf16 (!%p2076_p4), %v4994_v47, %v4992_v46  ;;  %v5009_v53 = vld [vmem:[#allocation5 + $0x48] sm:$0xff] (!%p2076_p4)  ;;  %v5011_v54 = vld [vmem:[#allocation5 + $0x50] sm:$0xff] (!%p2076_p4)  ;;  %v5016_v57 = vld [vmem:[#allocation5 + $0x58] sm:$0xff] (!%p2076_p4) }
 0x522   : > { %2209 = vst [vmem:[%s4731_s23 + $0x8] sm:$0xff] (!%p2076_p4), %v3351_v44  ;;  %v3354_v56 = vpack.c.bf16 (!%p2076_p4), %v5009_v53, %v5007_v52  ;;  %v5018_v58 = vld [vmem:[#allocation5 + $0x60] sm:$0xff] (!%p2076_p4)  ;;  %v5020_v59 = vld [vmem:[#allocation5 + $0x68] sm:$0xff] (!%p2076_p4)  ;;  %2210 = vst [vmem:[%s4731_s23 + $0x10] sm:$0xff] (!%p2076_p4), %v3352_v50  ;;  %v3355_v60 = vpack.c.bf16 (!%p2076_p4), %v5016_v57, %v5011_v54 }
 0x523   : > { %2211 = vst [vmem:[%s4731_s23 + $0x18] sm:$0xff] (!%p2076_p4), %v3353_v51  ;;  %v3356_v61 = vpack.c.bf16 (!%p2076_p4), %v5020_v59, %v5018_v58  ;;  %v5028_v62 = vld [vmem:[#allocation5 + $0x70] sm:$0xff] (!%p2076_p4)  ;;  %v5030_v63 = vld [vmem:[#allocation5 + $0x78] sm:$0xff] (!%p2076_p4)  ;;  %v5032_v0 = vld [vmem:[#allocation5 + $0x80] sm:$0xff] (!%p2076_p4) }
 0x524   : > { %s5333_s6 = smov (!%p2076_p4), %s5332_s16  ;;  %v2224_v27 = vld [vmem:[%s5332_s16] sm:$0xff] (!%p2076_p4)  ;;  %2212 = vst [vmem:[%s4731_s23 + $0x20] sm:$0xff] (!%p2076_p4), %v3354_v56  ;;  %v3357_v1 = vpack.c.bf16 (!%p2076_p4), %v5030_v63, %v5028_v62  ;;  %v5037_v2 = vld [vmem:[#allocation5 + $0x88] sm:$0xff] (!%p2076_p4)  ;;  %v5039_v3 = vld [vmem:[#allocation5 + $0x90] sm:$0xff] (!%p2076_p4) }
 0x525   : > { %v2225_v28 = vld [vmem:[%s5333_s6 + $0x8] sm:$0xff] (!%p2076_p4)  ;;  %v2226_v29 = vld [vmem:[%s5333_s6 + $0x10] sm:$0xff] (!%p2076_p4)  ;;  %v2227_v31 = vld [vmem:[%s5333_s6 + $0x18] sm:$0xff] (!%p2076_p4)  ;;  %2213 = vst [vmem:[%s4731_s23 + $0x28] sm:$0xff] (!%p2076_p4), %v3355_v60  ;;  %v3358_v7 = vpack.c.bf16 (!%p2076_p4), %v5037_v2, %v5032_v0 }
 0x526   : > { %v3965_v30 = vpack.c.bf16 %v2225_v28, %v2224_v27  ;;  %v3969_v32 = vpack.c.bf16 %v2227_v31, %v2226_v29  ;;  %v2228_v33 = vld [vmem:[%s5333_s6 + $0x20] sm:$0xff]  ;;  %v2229_v34 = vld [vmem:[%s5333_s6 + $0x28] sm:$0xff]  ;;  %v2230_v35 = vld [vmem:[%s5333_s6 + $0x30] sm:$0xff]  ;;  %2214 = vst [vmem:[%s4731_s23 + $0x30] sm:$0xff] %v3356_v61 }
 0x527   : > { %v3973_v36 = vpack.c.bf16 %v2229_v34, %v2228_v33  ;;  %v2231_v37 = vld [vmem:[%s5333_s6 + $0x38] sm:$0xff]  ;;  %v2232_v48 = vld [vmem:[%s5333_s6 + $0x40] sm:$0xff]  ;;  %v2233_v49 = vld [vmem:[%s5333_s6 + $0x48] sm:$0xff]  ;;  %2215 = vst [vmem:[%s4731_s23 + $0x38] sm:$0xff] %v3357_v1 }
 0x528   : > { %3966 = vmatprep.subr.bf16.mxu0 %v3965_v30  ;;  %3998 = vmatprep.subr.bf16.mxu1 %v3965_v30  ;;  %v3977_v55 = vpack.c.bf16 %v2231_v37, %v2230_v35  ;;  %v5041_v4 = vld [vmem:[#allocation5 + $0x98] sm:$0xff]  ;;  %v2234_v5 = vld [vmem:[%s5333_s6 + $0x50] sm:$0xff]  ;;  %v5055_v9 = vld [vmem:[#allocation5 + $0xa0] sm:$0xff]  ;;  %v3981_v12 = vpack.c.bf16 %v2233_v49, %v2232_v48  ;;  %2216 = vst [vmem:[%s4731_s23 + $0x40] sm:$0xff] %v3358_v7 }
 0x529   : > { %3968 = vmatpush3.bf16.msra.mxu0 %v3965_v30  ;;  %4000 = vmatpush3.bf16.msra.mxu1 %v3965_v30  ;;  %v2235_v6 = vld [vmem:[%s5333_s6 + $0x58] sm:$0xff]  ;;  %v3359_v8 = vpack.c.bf16 %v5041_v4, %v5039_v3  ;;  %v5057_v10 = vld [vmem:[#allocation5 + $0xa8] sm:$0xff]  ;;  %v5059_v11 = vld [vmem:[#allocation5 + $0xb0] sm:$0xff] }
 0x52a   : > { %3970 = vmatprep.subr.bf16.mxu0 %v3969_v32  ;;  %4002 = vmatprep.subr.bf16.mxu1 %v3969_v32  ;;  %v3360_v13 = vpack.c.bf16 %v5057_v10, %v5055_v9  ;;  %v5064_v14 = vld [vmem:[#allocation5 + $0xb8] sm:$0xff]  ;;  %v5066_v15 = vld [vmem:[#allocation5 + $0xc0] sm:$0xff]  ;;  %v5068_v16 = vld [vmem:[#allocation5 + $0xc8] sm:$0xff]  ;;  %v3985_v28 = vpack.c.bf16 %v2235_v6, %v2234_v5 }
 0x52b   : > { %2217 = vst [vmem:[%s4731_s23 + $0x48] sm:$0xff] %v3359_v8  ;;  %v3361_v17 = vpack.c.bf16 %v5064_v14, %v5059_v11  ;;  %v3362_v18 = vpack.c.bf16 %v5068_v16, %v5066_v15  ;;  %v5076_v19 = vld [vmem:[#allocation5 + $0xd0] sm:$0xff]  ;;  %v5078_v20 = vld [vmem:[#allocation5 + $0xd8] sm:$0xff]  ;;  %v5080_v21 = vld [vmem:[#allocation5 + $0xe0] sm:$0xff] }
 0x52c   : > { %2218 = vst [vmem:[%s4731_s23 + $0x50] sm:$0xff] %v3360_v13  ;;  %v3363_v22 = vpack.c.bf16 %v5078_v20, %v5076_v19  ;;  %v2109_v23 = vld [vmem:[#allocation5 + $0xe8] sm:$0xff]  ;;  %v2110_v24 = vld [vmem:[#allocation5 + $0xf0] sm:$0xff]  ;;  %v2111_v25 = vld [vmem:[#allocation5 + $0xf8] sm:$0xff] }
 0x52d   : > { %3972 = vmatpush3.bf16.msra.mxu0 %v3969_v32  ;;  %4004 = vmatpush3.bf16.msra.mxu1 %v3969_v32  ;;  %2219 = vst [vmem:[%s4731_s23 + $0x58] sm:$0xff] %v3361_v17  ;;  %2220 = vst [vmem:[%s4731_s23 + $0x60] sm:$0xff] %v3362_v18  ;;  %v3364_v26 = vpack.c.bf16 %v2109_v23, %v5080_v21  ;;  %v3365_v27 = vpack.c.bf16 %v2111_v25, %v2110_v24  ;;  %v2236_v29 = vld [vmem:[%s5333_s6 + $0x60] sm:$0xff]  ;;  %v2237_v30 = vld [vmem:[%s5333_s6 + $0x68] sm:$0xff] }
 0x52e   : > { %3974 = vmatprep.subr.bf16.mxu0 %v3973_v36  ;;  %4006 = vmatprep.subr.bf16.mxu1 %v3973_v36  ;;  %2221 = vst [vmem:[%s4731_s23 + $0x68] sm:$0xff] %v3363_v22  ;;  %v3989_v31 = vpack.c.bf16 %v2237_v30, %v2236_v29  ;;  %v2238_v32 = vld [vmem:[%s5333_s6 + $0x70] sm:$0xff]  ;;  %v2239_v33 = vld [vmem:[%s5333_s6 + $0x78] sm:$0xff] }
 0x52f   : > { %2222 = vst [vmem:[%s4731_s23 + $0x70] sm:$0xff] %v3364_v26  ;;  %2223 = vst [vmem:[%s4731_s23 + $0x78] sm:$0xff] %v3365_v27  ;;  %v3993_v34 = vpack.c.bf16 %v2239_v33, %v2238_v32  ;;  %s5334_s23 = sld [smem:[#allocation12_spill]] }
 0x531   : > { %3976 = vmatpush3.bf16.msra.mxu0 %v3973_v36  ;;  %4008 = vmatpush3.bf16.msra.mxu1 %v3973_v36 }
 0x532   : > { %3978 = vmatprep.subr.bf16.mxu0 %v3977_v55  ;;  %4010 = vmatprep.subr.bf16.mxu1 %v3977_v55 }
 0x535   : > { %3980 = vmatpush3.bf16.msra.mxu0 %v3977_v55  ;;  %4012 = vmatpush3.bf16.msra.mxu1 %v3977_v55  ;;  %s5335_s13 = sshll.u32 %s5334_s23, 7 }
 0x536   : > { %3982 = vmatprep.subr.bf16.mxu0 %v3981_v12  ;;  %4014 = vmatprep.subr.bf16.mxu1 %v3981_v12  ;;  %s5132_s25 = scalar_lea.vmem [#allocation3], %s5335_s13 }
 0x539   : > { %3984 = vmatpush3.bf16.msra.mxu0 %v3981_v12  ;;  %4016 = vmatpush3.bf16.msra.mxu1 %v3981_v12 }
 0x53a   : > { %3986 = vmatprep.subr.bf16.mxu0 %v3985_v28  ;;  %4018 = vmatprep.subr.bf16.mxu1 %v3985_v28 }
 0x53d   : > { %3988 = vmatpush3.bf16.msra.mxu0 %v3985_v28  ;;  %4020 = vmatpush3.bf16.msra.mxu1 %v3985_v28 }
 0x53e   : > { %3990 = vmatprep.subr.bf16.mxu0 %v3989_v31  ;;  %4022 = vmatprep.subr.bf16.mxu1 %v3989_v31 }
 0x541   : > { %3992 = vmatpush3.bf16.msra.mxu0 %v3989_v31  ;;  %4024 = vmatpush3.bf16.msra.mxu1 %v3989_v31 }
 0x542   : > { %3994 = vmatprep.subr.bf16.mxu0 %v3993_v34  ;;  %4026 = vmatprep.subr.bf16.mxu1 %v3993_v34 }
 0x545   : > { %3996 = vmatpush3.bf16.msra.mxu0 %v3993_v34  ;;  %4028 = vmatpush3.bf16.msra.mxu1 %v3993_v34 }
 0x548   : > { %3798 = vmatmul.mubr.f32.vlgmr.msra.gmra.mrb[0].mxu0 %v4982_v41  ;;  %3854 = vmatmul.mubr.f32.vlgmr.msra.gmra.mrb[0].mxu1 %v4984_v42 }
 0x549   : > { %3800 = vmatprep.mubr.f32.mxu0 %v4986_v43  ;;  %3856 = vmatprep.mubr.f32.mxu1 %v4990_v45 }
 0x54c   : > { %3801 = vmatmul.mubr.f32.gmra.mrb[2].mxu0 %v4992_v46  ;;  %3857 = vmatmul.mubr.f32.gmra.mrb[2].mxu1 %v4994_v47 }
 0x54d   : > { %3803 = vmatprep.mubr.f32.mxu0 %v5007_v52  ;;  %3859 = vmatprep.mubr.f32.mxu1 %v5009_v53 }
 0x550   : > { %3804 = vmatmul.mubr.f32.gmra.mrb[4].mxu0 %v5011_v54  ;;  %3860 = vmatmul.mubr.f32.gmra.mrb[4].mxu1 %v5016_v57 }
 0x551   : > { %3806 = vmatprep.mubr.f32.mxu0 %v5018_v58  ;;  %3862 = vmatprep.mubr.f32.mxu1 %v5020_v59 }
 0x554   : > { %3807 = vmatmul.mubr.f32.gmra.mrb[6].mxu0 %v5028_v62  ;;  %3863 = vmatmul.mubr.f32.gmra.mrb[6].mxu1 %v5030_v63 }
 0x555   : > { %3809 = vmatprep.mubr.f32.mxu0 %v5032_v0  ;;  %3865 = vmatprep.mubr.f32.mxu1 %v5037_v2 }
 0x558   : > { %3810 = vmatmul.mubr.f32.gmra.mrb[8].mxu0 %v5039_v3  ;;  %3866 = vmatmul.mubr.f32.gmra.mrb[8].mxu1 %v5041_v4 }
 0x559   : > { %3812 = vmatprep.mubr.f32.mxu0 %v5055_v9  ;;  %3868 = vmatprep.mubr.f32.mxu1 %v5057_v10 }
 0x55c   : > { %3813 = vmatmul.mubr.f32.gmra.mrb[10].mxu0 %v5059_v11  ;;  %3869 = vmatmul.mubr.f32.gmra.mrb[10].mxu1 %v5064_v14 }
 0x55d   : > { %3815 = vmatprep.mubr.f32.mxu0 %v5066_v15  ;;  %3871 = vmatprep.mubr.f32.mxu1 %v5068_v16 }
 0x560   : > { %3816 = vmatmul.mubr.f32.gmra.mrb[12].mxu0 %v5076_v19  ;;  %3872 = vmatmul.mubr.f32.gmra.mrb[12].mxu1 %v5078_v20 }
 0x561   : > { %3818 = vmatprep.mubr.f32.mxu0 %v5080_v21  ;;  %3874 = vmatprep.mubr.f32.mxu1 %v2109_v23 }
 0x564   : > { %3819 = vmatmul.mubr.f32.gmra.mrb[14].mxu0 %v2110_v24  ;;  %3875 = vmatmul.mubr.f32.gmra.mrb[14].mxu1 %v2111_v25 }
 0x61b   : > { %v3799_v35 = vpop.f32.mrb[0].mxu0  ;;  %v3855_v36 = vpop.f32.mrb[0].mxu1 }
 0x61c   : > { %v2306_v37 = vpop.f32.mrb[1].mxu0  ;;  %v2472_v38 = vpop.f32.mrb[1].mxu1 }
 0x61d   : > { %v2385_v39 = vpack.c.bf16 %v3799_v35, %v2306_v37  ;;  %v2551_v40 = vpack.c.bf16 %v3855_v36, %v2472_v38 }
 0x61f   : > { %2398 = vst [vmem:[%s5132_s25] sm:$0xff] %v2385_v39  ;;  %2559 = vst [vmem:[%s5132_s25 + $0x8] sm:$0xff] %v2551_v40  ;;  %v3802_v41 = vpop.f32.mrb[2].mxu0  ;;  %v3858_v42 = vpop.f32.mrb[2].mxu1 }
 0x620   : > { %v2316_v43 = vpop.f32.mrb[3].mxu0  ;;  %v2482_v44 = vpop.f32.mrb[3].mxu1 }
 0x621   : > { %v2386_v45 = vpack.c.bf16 %v3802_v41, %v2316_v43  ;;  %v2552_v46 = vpack.c.bf16 %v3858_v42, %v2482_v44 }
 0x623   : > { %2399 = vst [vmem:[%s5132_s25 + $0x10] sm:$0xff] %v2386_v45  ;;  %2560 = vst [vmem:[%s5132_s25 + $0x18] sm:$0xff] %v2552_v46  ;;  %v3805_v47 = vpop.f32.mrb[4].mxu0  ;;  %v3861_v48 = vpop.f32.mrb[4].mxu1 }
 0x624   : > { %v2326_v49 = vpop.f32.mrb[5].mxu0  ;;  %v2492_v50 = vpop.f32.mrb[5].mxu1 }
 0x625   : > { %v2387_v51 = vpack.c.bf16 %v3805_v47, %v2326_v49  ;;  %v2553_v52 = vpack.c.bf16 %v3861_v48, %v2492_v50 }
 0x627   : > { %2400 = vst [vmem:[%s5132_s25 + $0x20] sm:$0xff] %v2387_v51  ;;  %2561 = vst [vmem:[%s5132_s25 + $0x28] sm:$0xff] %v2553_v52  ;;  %v3808_v53 = vpop.f32.mrb[6].mxu0  ;;  %v3864_v54 = vpop.f32.mrb[6].mxu1 }
 0x628   : > { %v2336_v55 = vpop.f32.mrb[7].mxu0  ;;  %v2502_v56 = vpop.f32.mrb[7].mxu1 }
 0x629   : > { %v2388_v57 = vpack.c.bf16 %v3808_v53, %v2336_v55  ;;  %v2554_v58 = vpack.c.bf16 %v3864_v54, %v2502_v56 }
 0x62b   : > { %2401 = vst [vmem:[%s5132_s25 + $0x30] sm:$0xff] %v2388_v57  ;;  %2562 = vst [vmem:[%s5132_s25 + $0x38] sm:$0xff] %v2554_v58  ;;  %v3811_v59 = vpop.f32.mrb[8].mxu0  ;;  %v3867_v60 = vpop.f32.mrb[8].mxu1 }
 0x62c   : > { %v2346_v61 = vpop.f32.mrb[9].mxu0  ;;  %v2512_v62 = vpop.f32.mrb[9].mxu1 }
 0x62d   : > { %v2389_v63 = vpack.c.bf16 %v3811_v59, %v2346_v61  ;;  %v2555_v0 = vpack.c.bf16 %v3867_v60, %v2512_v62 }
 0x62f   : > { %2402 = vst [vmem:[%s5132_s25 + $0x40] sm:$0xff] %v2389_v63  ;;  %2563 = vst [vmem:[%s5132_s25 + $0x48] sm:$0xff] %v2555_v0  ;;  %v3814_v1 = vpop.f32.mrb[10].mxu0  ;;  %v3870_v2 = vpop.f32.mrb[10].mxu1 }
 0x630   : > { %v2356_v3 = vpop.f32.mrb[11].mxu0  ;;  %v2522_v4 = vpop.f32.mrb[11].mxu1 }
 0x631   : > { %v2390_v5 = vpack.c.bf16 %v3814_v1, %v2356_v3  ;;  %v2556_v6 = vpack.c.bf16 %v3870_v2, %v2522_v4 }
 0x633   : > { %2403 = vst [vmem:[%s5132_s25 + $0x50] sm:$0xff] %v2390_v5  ;;  %2564 = vst [vmem:[%s5132_s25 + $0x58] sm:$0xff] %v2556_v6  ;;  %v3817_v7 = vpop.f32.mrb[12].mxu0  ;;  %v3873_v8 = vpop.f32.mrb[12].mxu1 }
 0x634   : > { %v2366_v9 = vpop.f32.mrb[13].mxu0  ;;  %v2532_v10 = vpop.f32.mrb[13].mxu1 }
 0x635   : > { %v2391_v11 = vpack.c.bf16 %v3817_v7, %v2366_v9  ;;  %v2557_v12 = vpack.c.bf16 %v3873_v8, %v2532_v10 }
 0x637   : > { %2404 = vst [vmem:[%s5132_s25 + $0x60] sm:$0xff] %v2391_v11  ;;  %2565 = vst [vmem:[%s5132_s25 + $0x68] sm:$0xff] %v2557_v12  ;;  %v3820_v13 = vpop.f32.mrb[14].mxu0  ;;  %v3876_v14 = vpop.f32.mrb[14].mxu1 }
 0x638   : > { %v2376_v15 = vpop.f32.mrb[15].mxu0  ;;  %v2542_v16 = vpop.f32.mrb[15].mxu1 }
 0x639   : > { %v2392_v17 = vpack.c.bf16 %v3820_v13, %v2376_v15  ;;  %v2558_v18 = vpack.c.bf16 %v3876_v14, %v2542_v16 }
 0x63b   : > { %2405 = vst [vmem:[%s5132_s25 + $0x70] sm:$0xff] %v2392_v17  ;;  %2566 = vst [vmem:[%s5132_s25 + $0x78] sm:$0xff] %v2558_v18 }
 0x63c PF: > { %p2567_p5 = pnand %p2075_p3, %p1552_p13 }
 0x63d   : > { %v2571_v19 = vld [vmem:[#allocation5] sm:$0xff] (!%p2567_p5)  ;;  %v2573_v20 = vld [vmem:[#allocation5 + $0x10] sm:$0xff] (!%p2567_p5)  ;;  %s5338_s7 = sld [smem:[#allocation21_spill]] (!%p2567_p5)  ;;  %v2572_v52 = vld [vmem:[#allocation5 + $0x8] sm:$0xff] (!%p2567_p5) }
 0x63e   : > { %2570 = sbr.rel (%p2567_p5) target bundleno = 1868 (0x74c), region = 196  ;;  %v2575_v21 = vld [vmem:[#allocation5 + $0x20] sm:$0xff] (!%p2567_p5)  ;;  %v2577_v22 = vld [vmem:[#allocation5 + $0x30] sm:$0xff] (!%p2567_p5)  ;;  %v3402_v25 = vpack.c.bf16 (!%p2567_p5), %v2573_v20, %v2571_v19  ;;  %3909 = vmatprep.mubr.f32.mxu0 (!%p2567_p5), %v2572_v52  ;;  %v2588_v55 = vld [vmem:[#allocation5 + $0x88] sm:$0xff] (!%p2567_p5) }
 0x63f   : > { %v2579_v23 = vld [vmem:[#allocation5 + $0x40] sm:$0xff] (!%p2567_p5)  ;;  %v2581_v24 = vld [vmem:[#allocation5 + $0x50] sm:$0xff] (!%p2567_p5)  ;;  %v3407_v29 = vpack.c.bf16 (!%p2567_p5), %v2577_v22, %v2575_v21  ;;  %3921 = vmatprep.mubr.f32.mxu1 (!%p2567_p5), %v2588_v55  ;;  %v2574_v5 = vld [vmem:[#allocation5 + $0x18] sm:$0xff] (!%p2567_p5) }
 0x640   : > { %v2583_v26 = vld [vmem:[#allocation5 + $0x60] sm:$0xff] (!%p2567_p5)  ;;  %v2585_v27 = vld [vmem:[#allocation5 + $0x70] sm:$0xff] (!%p2567_p5)  ;;  %v3412_v30 = vpack.c.bf16 (!%p2567_p5), %v2581_v24, %v2579_v23  ;;  %3403 = vst [vmem:[%s4739_s29] sm:$0xff] (!%p2567_p5), %v3402_v25   ;;  %v2590_v6 = vld [vmem:[#allocation5 + $0x98] sm:$0xff] (!%p2567_p5) }
 0x641   : > { %v2587_v28 = vld [vmem:[#allocation5 + $0x80] sm:$0xff] (!%p2567_p5)  ;;  %v2589_v31 = vld [vmem:[#allocation5 + $0x90] sm:$0xff] (!%p2567_p5)  ;;  %v3417_v34 = vpack.c.bf16 (!%p2567_p5), %v2585_v27, %v2583_v26  ;;  %3479 = vst [vmem:[%s4739_s29 + $0x8] sm:$0xff] (!%p2567_p5), %v3407_v29   ;;  %v2576_v7 = vld [vmem:[#allocation5 + $0x28] sm:$0xff] (!%p2567_p5) }
 0x642   : > { %v2591_v32 = vld [vmem:[#allocation5 + $0xa0] sm:$0xff] (!%p2567_p5)  ;;  %v2593_v33 = vld [vmem:[#allocation5 + $0xb0] sm:$0xff] (!%p2567_p5)  ;;  %3480 = vst [vmem:[%s4739_s29 + $0x10] sm:$0xff] (!%p2567_p5), %v3412_v30   ;;  %v3422_v38 = vpack.c.bf16 (!%p2567_p5), %v2589_v31, %v2587_v28  ;;  %v2592_v8 = vld [vmem:[#allocation5 + $0xa8] sm:$0xff] (!%p2567_p5) }
 0x643   : > { %v2595_v35 = vld [vmem:[#allocation5 + $0xc0] sm:$0xff] (!%p2567_p5)  ;;  %v2597_v36 = vld [vmem:[#allocation5 + $0xd0] sm:$0xff] (!%p2567_p5)  ;;  %v3427_v39 = vpack.c.bf16 (!%p2567_p5), %v2593_v33, %v2591_v32  ;;  %3481 = vst [vmem:[%s4739_s29 + $0x18] sm:$0xff] (!%p2567_p5), %v3417_v34   ;;  %v2684_v43 = vld [vmem:[%s5338_s7 + $0x8] sm:$0xff] (!%p2567_p5) }
 0x644   : > { %v2599_v37 = vld [vmem:[#allocation5 + $0xe0] sm:$0xff] (!%p2567_p5)  ;;  %v2601_v40 = vld [vmem:[#allocation5 + $0xf0] sm:$0xff] (!%p2567_p5)  ;;  %v3432_v41 = vpack.c.bf16 (!%p2567_p5), %v2597_v36, %v2595_v35  ;;  %3482 = vst [vmem:[%s4739_s29 + $0x20] sm:$0xff] (!%p2567_p5), %v3422_v38   ;;  %v2686_v47 = vld [vmem:[%s5338_s7 + $0x18] sm:$0xff] (!%p2567_p5) }
 0x645   : > { %v2683_v42 = vld [vmem:[%s5338_s7] sm:$0xff]  ;;  %3483 = vst [vmem:[%s4739_s29 + $0x28] sm:$0xff] %v3427_v39   ;;  %v3437_v44 = vpack.c.bf16 %v2601_v40, %v2599_v37  ;;  %v2685_v46 = vld [vmem:[%s5338_s7 + $0x10] sm:$0xff]  ;;  %v2688_v50 = vld [vmem:[%s5338_s7 + $0x28] sm:$0xff] }
 0x646   : > { %v4029_v45 = vpack.c.bf16 %v2684_v43, %v2683_v42  ;;  %3484 = vst [vmem:[%s4739_s29 + $0x30] sm:$0xff] %v3432_v41   ;;  %v4033_v48 = vpack.c.bf16 %v2686_v47, %v2685_v46  ;;  %v2687_v49 = vld [vmem:[%s5338_s7 + $0x20] sm:$0xff]  ;;  %v2689_v53 = vld [vmem:[%s5338_s7 + $0x30] sm:$0xff]  ;;  %v2690_v54 = vld [vmem:[%s5338_s7 + $0x38] sm:$0xff] }
 0x647   : > { %3485 = vst [vmem:[%s4739_s29 + $0x38] sm:$0xff] %v3437_v44   ;;  %v4037_v51 = vpack.c.bf16 %v2688_v50, %v2687_v49  ;;  %v4041_v56 = vpack.c.bf16 %v2690_v54, %v2689_v53  ;;  %v2691_v57 = vld [vmem:[%s5338_s7 + $0x40] sm:$0xff]  ;;  %v2692_v58 = vld [vmem:[%s5338_s7 + $0x48] sm:$0xff]  ;;  %v2693_v60 = vld [vmem:[%s5338_s7 + $0x50] sm:$0xff]  ;;  %s5339_s29 = sld [smem:[#allocation12_spill]] }
 0x648   : > { %4030 = vmatprep.subr.bf16.mxu0 %v4029_v45  ;;  %4125 = vmatprep.subr.bf16.mxu1 %v4029_v45  ;;  %v4045_v59 = vpack.c.bf16 %v2692_v58, %v2691_v57  ;;  %v2694_v61 = vld [vmem:[%s5338_s7 + $0x58] sm:$0xff]  ;;  %v2695_v63 = vld [vmem:[%s5338_s7 + $0x60] sm:$0xff]  ;;  %v2696_v0 = vld [vmem:[%s5338_s7 + $0x68] sm:$0xff] }
 0x649   : > { %4032 = vmatpush3.bf16.msra.mxu0 %v4029_v45  ;;  %4133 = vmatpush3.bf16.msra.mxu1 %v4029_v45  ;;  %v4049_v62 = vpack.c.bf16 %v2694_v61, %v2693_v60  ;;  %v4053_v1 = vpack.c.bf16 %v2696_v0, %v2695_v63  ;;  %v2697_v2 = vld [vmem:[%s5338_s7 + $0x70] sm:$0xff]  ;;  %v2698_v3 = vld [vmem:[%s5338_s7 + $0x78] sm:$0xff]  ;;  %v2580_v11 = vld [vmem:[#allocation5 + $0x48] sm:$0xff] }
 0x64a   : > { %4034 = vmatprep.subr.bf16.mxu0 %v4033_v48  ;;  %4126 = vmatprep.subr.bf16.mxu1 %v4033_v48  ;;  %v4057_v4 = vpack.c.bf16 %v2698_v3, %v2697_v2  ;;  %v2578_v9 = vld [vmem:[#allocation5 + $0x38] sm:$0xff]  ;;  %v2596_v12 = vld [vmem:[#allocation5 + $0xc8] sm:$0xff] }
 0x64b   : > { %v2594_v10 = vld [vmem:[#allocation5 + $0xb8] sm:$0xff]  ;;  %v2584_v15 = vld [vmem:[#allocation5 + $0x68] sm:$0xff] }
 0x64c   : > { %v2582_v13 = vld [vmem:[#allocation5 + $0x58] sm:$0xff]  ;;  %v2600_v16 = vld [vmem:[#allocation5 + $0xe8] sm:$0xff] }
 0x64d   : > { %4036 = vmatpush3.bf16.msra.mxu0 %v4033_v48  ;;  %4134 = vmatpush3.bf16.msra.mxu1 %v4033_v48  ;;  %v2598_v14 = vld [vmem:[#allocation5 + $0xd8] sm:$0xff]  ;;  %s5340_s0 = sshll.u32 %s5339_s29, 7 }
 0x64e   : > { %4038 = vmatprep.subr.bf16.mxu0 %v4037_v51  ;;  %4127 = vmatprep.subr.bf16.mxu1 %v4037_v51  ;;  %v2586_v17 = vld [vmem:[#allocation5 + $0x78] sm:$0xff]  ;;  %s2852_s30 = sshra.s32 %s5340_s0, 4 }
 0x64f   : > { %v2602_v18 = vld [vmem:[#allocation5 + $0xf8] sm:$0xff]  ;;  %s3325_s24 = sshll.u32 %s2852_s30, 3 }
 0x650   : > { %s2855_s26 = scalar_lea.vmem [#allocation4], %s3325_s24 }
 0x651   : > { %4040 = vmatpush3.bf16.msra.mxu0 %v4037_v51  ;;  %4135 = vmatpush3.bf16.msra.mxu1 %v4037_v51 }
 0x652   : > { %4042 = vmatprep.subr.bf16.mxu0 %v4041_v56  ;;  %4128 = vmatprep.subr.bf16.mxu1 %v4041_v56 }
 0x655   : > { %4044 = vmatpush3.bf16.msra.mxu0 %v4041_v56  ;;  %4136 = vmatpush3.bf16.msra.mxu1 %v4041_v56 }
 0x656   : > { %4046 = vmatprep.subr.bf16.mxu0 %v4045_v59  ;;  %4129 = vmatprep.subr.bf16.mxu1 %v4045_v59 }
 0x659   : > { %4048 = vmatpush3.bf16.msra.mxu0 %v4045_v59  ;;  %4137 = vmatpush3.bf16.msra.mxu1 %v4045_v59 }
 0x65a   : > { %4050 = vmatprep.subr.bf16.mxu0 %v4049_v62  ;;  %4130 = vmatprep.subr.bf16.mxu1 %v4049_v62 }
 0x65d   : > { %4052 = vmatpush3.bf16.msra.mxu0 %v4049_v62  ;;  %4138 = vmatpush3.bf16.msra.mxu1 %v4049_v62 }
 0x65e   : > { %4054 = vmatprep.subr.bf16.mxu0 %v4053_v1  ;;  %4131 = vmatprep.subr.bf16.mxu1 %v4053_v1 }
 0x661   : > { %4056 = vmatpush3.bf16.msra.mxu0 %v4053_v1  ;;  %4139 = vmatpush3.bf16.msra.mxu1 %v4053_v1 }
 0x662   : > { %4058 = vmatprep.subr.bf16.mxu0 %v4057_v4  ;;  %4132 = vmatprep.subr.bf16.mxu1 %v4057_v4 }
 0x665   : > { %4060 = vmatpush3.bf16.msra.mxu0 %v4057_v4  ;;  %4140 = vmatpush3.bf16.msra.mxu1 %v4057_v4 }
 0x668   : > { %3910 = vmatmul.mubr.f32.vlgmr.msra.gmra.mrb[0].mxu0 %v2574_v5  ;;  %3922 = vmatmul.mubr.f32.vlgmr.msra.gmra.mrb[0].mxu1 %v2590_v6 }
 0x669   : > { %3912 = vmatprep.mubr.f32.mxu0 %v2576_v7  ;;  %3924 = vmatprep.mubr.f32.mxu1 %v2592_v8 }
 0x66c   : > { %3913 = vmatmul.mubr.f32.gmra.mrb[2].mxu0 %v2578_v9  ;;  %3925 = vmatmul.mubr.f32.gmra.mrb[2].mxu1 %v2594_v10 }
 0x66d   : > { %3915 = vmatprep.mubr.f32.mxu0 %v2580_v11  ;;  %3927 = vmatprep.mubr.f32.mxu1 %v2596_v12 }
 0x670   : > { %3916 = vmatmul.mubr.f32.gmra.mrb[4].mxu0 %v2582_v13  ;;  %3928 = vmatmul.mubr.f32.gmra.mrb[4].mxu1 %v2598_v14 }
 0x671   : > { %3918 = vmatprep.mubr.f32.mxu0 %v2584_v15  ;;  %3930 = vmatprep.mubr.f32.mxu1 %v2600_v16 }
 0x674   : > { %3919 = vmatmul.mubr.f32.gmra.mrb[6].mxu0 %v2586_v17  ;;  %3931 = vmatmul.mubr.f32.gmra.mrb[6].mxu1 %v2602_v18 }
 0x73b   : > { %v3911_v19 = vpop.f32.mrb[0].mxu0  ;;  %v3923_v20 = vpop.f32.mrb[0].mxu1 }
 0x73c   : > { %v2765_v21 = vpop.f32.mrb[1].mxu0  ;;  %v2805_v22 = vpop.f32.mrb[1].mxu1 }
 0x73d   : > { %v2844_v23 = vpack.c.bf16 %v3911_v19, %v2765_v21  ;;  %v2848_v24 = vpack.c.bf16 %v3923_v20, %v2805_v22 }
 0x73f   : > { %2856 = vst [vmem:[%s2855_s26] sm:$0xff] %v2844_v23  ;;  %2860 = vst [vmem:[%s2855_s26 + $0x20] sm:$0xff] %v2848_v24  ;;  %v3914_v25 = vpop.f32.mrb[2].mxu0  ;;  %v3926_v26 = vpop.f32.mrb[2].mxu1 }
 0x740   : > { %v2775_v27 = vpop.f32.mrb[3].mxu0  ;;  %v2815_v28 = vpop.f32.mrb[3].mxu1 }
 0x741   : > { %v2845_v29 = vpack.c.bf16 %v3914_v25, %v2775_v27  ;;  %v2849_v30 = vpack.c.bf16 %v3926_v26, %v2815_v28 }
 0x743   : > { %2857 = vst [vmem:[%s2855_s26 + $0x8] sm:$0xff] %v2845_v29  ;;  %2861 = vst [vmem:[%s2855_s26 + $0x28] sm:$0xff] %v2849_v30  ;;  %v3917_v31 = vpop.f32.mrb[4].mxu0  ;;  %v3929_v32 = vpop.f32.mrb[4].mxu1 }
 0x744   : > { %v2785_v33 = vpop.f32.mrb[5].mxu0  ;;  %v2825_v34 = vpop.f32.mrb[5].mxu1 }
 0x745   : > { %v2846_v35 = vpack.c.bf16 %v3917_v31, %v2785_v33  ;;  %v2850_v36 = vpack.c.bf16 %v3929_v32, %v2825_v34 }
 0x747   : > { %2858 = vst [vmem:[%s2855_s26 + $0x10] sm:$0xff] %v2846_v35  ;;  %2862 = vst [vmem:[%s2855_s26 + $0x30] sm:$0xff] %v2850_v36  ;;  %v3920_v37 = vpop.f32.mrb[6].mxu0  ;;  %v3932_v38 = vpop.f32.mrb[6].mxu1 }
 0x748   : > { %v2795_v39 = vpop.f32.mrb[7].mxu0  ;;  %v2835_v40 = vpop.f32.mrb[7].mxu1 }
 0x749   : > { %v2847_v41 = vpack.c.bf16 %v3920_v37, %v2795_v39  ;;  %v2851_v42 = vpack.c.bf16 %v3932_v38, %v2835_v40 }
 0x74b   : > { %2859 = vst [vmem:[%s2855_s26 + $0x18] sm:$0xff] %v2847_v41  ;;  %2863 = vst [vmem:[%s2855_s26 + $0x38] sm:$0xff] %v2851_v42 }
 0x74c PF: > { %p2864_p6 = pnand %p2075_p3, %p1850_p1 }
 0x74d   : > { %v2868_v43 = vld [vmem:[#allocation5] sm:$0xff] (!%p2864_p6)  ;;  %v2869_v44 = vld [vmem:[#allocation5 + $0x10] sm:$0xff] (!%p2864_p6)  ;;  %s5343_s16 = sld [smem:[#allocation22_spill]] (!%p2864_p6) }
 0x74e   : > { %2867 = sbr.rel (%p2864_p6) target bundleno = 1886 (0x75e), region = 200  ;;  %v2870_v48 = vld [vmem:[#allocation5 + $0x20] sm:$0xff] (!%p2864_p6)  ;;  %v2871_v49 = vld [vmem:[#allocation5 + $0x30] sm:$0xff] (!%p2864_p6) }
 0x74f   : > { %v2872_v50 = vld [vmem:[#allocation5 + $0x40] sm:$0xff] (!%p2864_p6)  ;;  %v2873_v53 = vld [vmem:[#allocation5 + $0x50] sm:$0xff] (!%p2864_p6) }
 0x750   : > { %v2874_v55 = vld [vmem:[#allocation5 + $0x60] sm:$0xff] (!%p2864_p6)  ;;  %v2875_v56 = vld [vmem:[#allocation5 + $0x70] sm:$0xff] (!%p2864_p6) }
 0x751   : > { %v2876_v61 = vld [vmem:[#allocation5 + $0x80] sm:$0xff] (!%p2864_p6)  ;;  %v2877_v62 = vld [vmem:[#allocation5 + $0x90] sm:$0xff] (!%p2864_p6) }
 0x752   : > { %v2878_v63 = vld [vmem:[#allocation5 + $0xa0] sm:$0xff] (!%p2864_p6)  ;;  %v2879_v3 = vld [vmem:[#allocation5 + $0xb0] sm:$0xff] (!%p2864_p6) }
 0x753   : > { %v3326_v45 = vld [vmem:[%s5343_s16] ss:$0 sm:$0xff] (!%p2864_p6)  ;;  %v2881_v6 = vld [vmem:[#allocation5 + $0xd0] sm:$0xff] (!%p2864_p6) }
 0x754   : > { %v2891_v46 = vadd.f32 (!%p2864_p6), %v3326_v45, %v2868_v43  ;;  %v2892_v47 = vadd.f32 (!%p2864_p6), %v3326_v45, %v2869_v44  ;;  %v2893_v51 = vadd.f32 (!%p2864_p6), %v3326_v45, %v2870_v48  ;;  %v2894_v52 = vadd.f32 (!%p2864_p6), %v3326_v45, %v2871_v49  ;;  %v2880_v5 = vld [vmem:[#allocation5 + $0xc0] sm:$0xff] (!%p2864_p6)  ;;  %v2883_v12 = vld [vmem:[#allocation5 + $0xf0] sm:$0xff] (!%p2864_p6) }
 0x755   : > { %v2895_v54 = vadd.f32 %v3326_v45, %v2872_v50  ;;  %v2896_v58 = vadd.f32 %v3326_v45, %v2873_v53  ;;  %v2897_v59 = vadd.f32 %v3326_v45, %v2874_v55  ;;  %v2898_v60 = vadd.f32 %v3326_v45, %v2875_v56  ;;  %v2882_v11 = vld [vmem:[#allocation5 + $0xe0] sm:$0xff] }
 0x756   : > { %v3442_v57 = vpack.c.bf16 %v2892_v47, %v2891_v46  ;;  %v3447_v0 = vpack.c.bf16 %v2894_v52, %v2893_v51  ;;  %v2899_v1 = vadd.f32 %v3326_v45, %v2876_v61  ;;  %v2900_v2 = vadd.f32 %v3326_v45, %v2877_v62 }
 0x757   : > { %v2901_v4 = vadd.f32 %v3326_v45, %v2878_v63  ;;  %v3452_v7 = vpack.c.bf16 %v2896_v58, %v2895_v54  ;;  %v3457_v8 = vpack.c.bf16 %v2898_v60, %v2897_v59  ;;  %v2902_v9 = vadd.f32 %v3326_v45, %v2879_v3 }
 0x758   : > { %3443 = vst [vmem:[%s4748_s2] sm:$0xff] %v3442_v57   ;;  %v2903_v10 = vadd.f32 %v3326_v45, %v2880_v5  ;;  %3486 = vst [vmem:[%s4748_s2 + $0x8] sm:$0xff] %v3447_v0   ;;  %v3462_v13 = vpack.c.bf16 %v2900_v2, %v2899_v1  ;;  %v2904_v14 = vadd.f32 %v3326_v45, %v2881_v6 }
 0x759   : > { %v2905_v15 = vadd.f32 %v3326_v45, %v2882_v11  ;;  %v2906_v16 = vadd.f32 %v3326_v45, %v2883_v12  ;;  %3487 = vst [vmem:[%s4748_s2 + $0x10] sm:$0xff] %v3452_v7   ;;  %3488 = vst [vmem:[%s4748_s2 + $0x18] sm:$0xff] %v3457_v8   ;;  %v3467_v17 = vpack.c.bf16 %v2902_v9, %v2901_v4 }
 0x75a   : > { %3489 = vst [vmem:[%s4748_s2 + $0x20] sm:$0xff] %v3462_v13   ;;  %v3472_v18 = vpack.c.bf16 %v2904_v14, %v2903_v10 }
 0x75b   : > { %v3477_v19 = vpack.c.bf16 %v2906_v16, %v2905_v15  ;;  %3490 = vst [vmem:[%s4748_s2 + $0x28] sm:$0xff] %v3467_v17  }
 0x75c   : > { %3491 = vst [vmem:[%s4748_s2 + $0x30] sm:$0xff] %v3472_v18  }
 0x75d   : > { %3492 = vst [vmem:[%s4748_s2 + $0x38] sm:$0xff] %v3477_v19  }
 0x75e PF: > { %s20_s21 = sadd.s32 1, %s4376_s21   ;;  %s5345_s25 = sld [smem:[#allocation14_spill]] }
 0x75f   : > { %p5228_p8 = scmp.ge.s32.totalorder %s20_s21, 29   ;;  %s5346_s2 = sld [smem:[#allocation15_spill]] }
 0x760   : > { %s5347_s30 = smov %s4332_s10  ;;  %s5348_s10 = smov %s4575_s28 }
 0x761   : > { %s5349_s11 = smov %s4340_s12  ;;  %s5350_s12 = smov %s4553_s4 }
 0x762   : > { %s5351_s13 = smov %s4348_s14  ;;  %s5352_s14 = smov %s4548_s17 }
 0x763   : > { %s5353_s15 = smov %s4364_s18  ;;  %s5354_s16 = smov %s4368_s19 }
 0x764   : > { %s5355_s17 = smov %s4372_s20  ;;  %s5356_s18 = smov %s5360_s22 }
 0x765   : > { %s5357_s19 = smov %s5345_s25  ;;  %s5358_s20 = smov %s5346_s2 }
 0x766   :  { %19 = sbr.rel (!%p5228_p8) target bundleno = 18 (0x12), region = 281 }

</bundles_post_ra>
